<compile_context>
chip_gen: v7x
topology: tpu7x:2x2x1
jax: 0.10.0
libtpu: 0.0.40
codegen_flags: <defaults>
</compile_context>

<pallas_src>
import functools

import jax
import jax.numpy as jnp
from jax import lax
from jax.experimental import pallas as pl
from jax.experimental.pallas import tpu as pltpu

INPUT_SIZE = 784
HIDDEN_SIZE = 500
NUM_CLASSES = 10
BN_EPS = 1e-5

# lane-dense padded sizes (multiples of 128)
IN_P = 896    # 784 -> 896
HID_P = 512   # 500 -> 512
OUT_P = 128   # 10  -> 128

NEG_INF = -1e30  # baked into padded b_out lanes so the softmax ignores them


def _round_up(x, m):
    return (x + m - 1) // m * m


# --------------------------------------------------------------------------- kernel math
def _linear_relu(h, w_ref, b_ref):
    """h @ W + b -> ReLU.  bf16 matmul operands, f32 MXU accumulation."""
    y = jnp.dot(h.astype(jnp.bfloat16), w_ref[...],
                preferred_element_type=jnp.float32) + b_ref[...]
    return jnp.maximum(y, 0.0)


def _masked_sums(h, row_mask):
    """Single-pass sum / sum-of-squares over rows (padded rows masked out once)."""
    hm = h if row_mask is None else h * row_mask
    return (jnp.sum(hm, axis=0, keepdims=True),
            jnp.sum(hm * hm, axis=0, keepdims=True))


def _bn_apply(h, g_ref, be_ref, mean, var):
    """BatchNorm1d normalize + affine folded into one scale/shift FMA."""
    scale = g_ref[...] * lax.rsqrt(var + BN_EPS)
    shift = be_ref[...] - mean * scale
    return h * scale + shift


def _softmax_store(logits, o_ref):
    m = jnp.max(logits, axis=1, keepdims=True)
    e = jnp.exp(logits - m)
    denom = jnp.sum(e, axis=1, keepdims=True)
    o_ref[...] = (e * pl.reciprocal(denom, approx=True)).astype(o_ref.dtype)


# --------------------------------------------------------------------------- fused (small-batch) kernel
def fused_kernel(x_ref,
                 w_in_ref, b_in_ref,
                 w1_ref, b1_ref, g1_ref, be1_ref,
                 w2_ref, b2_ref, g2_ref, be2_ref,
                 w_out_ref, b_out_ref,
                 o_ref, *, n_valid_rows):
    b_pad = x_ref.shape[0]
    inv_n = jnp.float32(1.0 / n_valid_rows)
    if n_valid_rows == b_pad:
        row_mask = None
    else:
        rows = lax.broadcasted_iota(jnp.int32, (b_pad, 1), 0)
        row_mask = (rows < n_valid_rows).astype(jnp.float32)

    z1 = _linear_relu(_linear_relu(x_ref[...], w_in_ref, b_in_ref), w1_ref, b1_ref)
    s1, ss1 = _masked_sums(z1, row_mask)
    mean1 = s1 * inv_n
    var1 = ss1 * inv_n - mean1 * mean1
    h1 = _bn_apply(z1, g1_ref, be1_ref, mean1, var1)

    z2 = _linear_relu(h1, w2_ref, b2_ref)
    s2, ss2 = _masked_sums(z2, row_mask)
    mean2 = s2 * inv_n
    var2 = ss2 * inv_n - mean2 * mean2
    h2 = _bn_apply(z2, g2_ref, be2_ref, mean2, var2)

    # padded class lanes already carry -1e30 in b_out (baked in init_params)
    logits = jnp.dot(h2.astype(jnp.bfloat16), w_out_ref[...],
                     preferred_element_type=jnp.float32) + b_out_ref[...]
    _softmax_store(logits, o_ref)


# --------------------------------------------------------------------------- tiled (large-batch) kernel
def tiled_kernel(x_ref,
                 w_in_ref, b_in_ref,
                 w1_ref, b1_ref, g1_ref, be1_ref,
                 w2_ref, b2_ref, g2_ref, be2_ref,
                 w_out_ref, b_out_ref,
                 o_ref,
                 stats1_ref, stats2_ref,
                 *, n_valid_rows, tile_b, b_pad):
    phase = pl.program_id(0)   # 0: BN1 stats, 1: BN2 stats, 2: finalize
    tile = pl.program_id(1)
    inv_n = jnp.float32(1.0 / n_valid_rows)

    @pl.when(jnp.logical_and(phase == 0, tile == 0))
    def _():
        stats1_ref[...] = jnp.zeros_like(stats1_ref)
        stats2_ref[...] = jnp.zeros_like(stats2_ref)

    if n_valid_rows == b_pad:
        row_mask = None
    else:
        rows = lax.broadcasted_iota(jnp.int32, (tile_b, 1), 0) + tile * tile_b
        row_mask = (rows < n_valid_rows).astype(jnp.float32)

    def z1_fn():
        return _linear_relu(_linear_relu(x_ref[...], w_in_ref, b_in_ref),
                            w1_ref, b1_ref)

    def bn1(z1):
        mean1 = stats1_ref[0:1, :] * inv_n
        var1 = stats1_ref[1:2, :] * inv_n - mean1 * mean1
        return _bn_apply(z1, g1_ref, be1_ref, mean1, var1)

    @pl.when(phase == 0)          # pass 1: accumulate BN1 full-batch statistics
    def _():
        s, ss = _masked_sums(z1_fn(), row_mask)
        stats1_ref[0:1, :] += s
        stats1_ref[1:2, :] += ss

    @pl.when(phase == 1)          # pass 2: apply BN1, accumulate BN2 statistics
    def _():
        z2 = _linear_relu(bn1(z1_fn()), w2_ref, b2_ref)
        s, ss = _masked_sums(z2, row_mask)
        stats2_ref[0:1, :] += s
        stats2_ref[1:2, :] += ss

    @pl.when(phase == 2)          # pass 3: apply BN1+BN2, out layer, softmax
    def _():
        z2 = _linear_relu(bn1(z1_fn()), w2_ref, b2_ref)
        mean2 = stats2_ref[0:1, :] * inv_n
        var2 = stats2_ref[1:2, :] * inv_n - mean2 * mean2
        h2 = _bn_apply(z2, g2_ref, be2_ref, mean2, var2)
        logits = jnp.dot(h2.astype(jnp.bfloat16), w_out_ref[...],
                         preferred_element_type=jnp.float32) + b_out_ref[...]
        _softmax_store(logits, o_ref)


# --------------------------------------------------------------------------- wrapper
def _vmem_estimate(weight_bytes, tile_rows, n_buffers):
    """Rough (double-)buffered VMEM footprint; clamped to [32 MiB, 64 MiB]."""
    act = tile_rows * (IN_P * 2 + OUT_P * 4) * n_buffers   # x tile (bf16) + out tile (f32)
    temps = 6 * tile_rows * HID_P * 4                      # z1/h1/z2/h2 f32 temps + headroom
    scratch = 2 * 2 * HID_P * 4
    est = weight_bytes * n_buffers + act + temps + scratch
    return int(min(64 * 2**20, max(2 * est, 32 * 2**20)))


def neural_net_forward(x, params, *, tile_b=256):
    """x: (B, INPUT_SIZE) float32 -> (B, NUM_CLASSES) float32 softmax probs."""
    B = x.shape[0]
    args_w = (params["w_in"], params["b_in"],
              params["w1"], params["b1"], params["g1"], params["be1"],
              params["w2"], params["b2"], params["g2"], params["be2"],
              params["w_out"], params["b_out"])
    weight_bytes = sum(int(a.size) * a.dtype.itemsize for a in args_w)
    flops_row = IN_P * HID_P + 2 * HID_P * HID_P + HID_P * OUT_P

    B16 = _round_up(max(B, 16), 16)          # bf16 packs 16 sublanes per vreg

    if B16 <= tile_b:
        # ---- small batch: whole batch is one tile -> fully fused, gridless ----
        B_pad = B16
        x_p = jnp.zeros((B_pad, IN_P), jnp.bfloat16)
        x_p = x_p.at[:B, :INPUT_SIZE].set(x.astype(jnp.bfloat16))
        out = pl.pallas_call(
            functools.partial(fused_kernel, n_valid_rows=B),
            out_shape=jax.ShapeDtypeStruct((B_pad, OUT_P), jnp.float32),
            in_specs=[pl.BlockSpec(memory_space=pltpu.VMEM)] * (1 + len(args_w)),
            out_specs=pl.BlockSpec(memory_space=pltpu.VMEM),
            compiler_params=pltpu.CompilerParams(
                vmem_limit_bytes=_vmem_estimate(weight_bytes, B_pad, n_buffers=1)),
            cost_estimate=pl.CostEstimate(
                flops=2 * B_pad * flops_row,
                transcendentals=B_pad * OUT_P,
                bytes_accessed=weight_bytes + B_pad * (IN_P * 2 + OUT_P * 4)),
        )(x_p, *args_w)
        return out[:B, :NUM_CLASSES]

    # ---- large batch: 3-phase batch-tiled grid, weights VMEM-resident ----
    n_tiles = pl.cdiv(B16, tile_b)
    B_pad = n_tiles * tile_b
    x_p = jnp.zeros((B_pad, IN_P), jnp.bfloat16)
    x_p = x_p.at[:B, :INPUT_SIZE].set(x.astype(jnp.bfloat16))

    def const_spec(a):                      # weights: same block every grid step -> loaded once
        return pl.BlockSpec(a.shape, lambda p, t: (0, 0))

    in_specs = ([pl.BlockSpec((tile_b, IN_P), lambda p, t: (t, 0))]
                + [const_spec(a) for a in args_w])
    out_spec = pl.BlockSpec((tile_b, OUT_P), lambda p, t: (t, 0))

    out = pl.pallas_call(
        functools.partial(tiled_kernel, n_valid_rows=B, tile_b=tile_b, b_pad=B_pad),
        grid=(3, n_tiles),
        out_shape=jax.ShapeDtypeStruct((B_pad, OUT_P), jnp.float32),
        in_specs=in_specs,
        out_specs=out_spec,
        scratch_shapes=[pltpu.VMEM((2, HID_P), jnp.float32),   # BN1 sum / sumsq
                        pltpu.VMEM((2, HID_P), jnp.float32)],  # BN2 sum / sumsq
        compiler_params=pltpu.CompilerParams(
            # Both axes carry the BN-stat accumulation -> "arbitrary" (sequential).
            dimension_semantics=("arbitrary", "arbitrary"),
            vmem_limit_bytes=_vmem_estimate(weight_bytes, tile_b, n_buffers=2)),
        cost_estimate=pl.CostEstimate(
            flops=2 * B_pad * (3 * IN_P * HID_P + 5 * HID_P * HID_P + HID_P * OUT_P),
            transcendentals=B_pad * OUT_P,
            bytes_accessed=weight_bytes + B_pad * (3 * IN_P * 2 + OUT_P * 4)),
    )(x_p, *args_w)
    return out[:B, :NUM_CLASSES]


# --------------------------------------------------------------------------- params & reference
def init_params(key):
    """PyTorch-style Linear init (U(-1/sqrt(fan_in), +1/sqrt(fan_in))) on the REAL fan-in,
    zero-padded to lane-dense shapes; weights bf16, biases/BN params f32."""
    keys = jax.random.split(key, 8)

    def linear(kw, kb, fan_in, fan_out, fan_in_p, fan_out_p):
        bound = 1.0 / float(fan_in) ** 0.5
        w = jax.random.uniform(kw, (fan_in, fan_out), jnp.float32, -bound, bound)
        b = jax.random.uniform(kb, (fan_out,), jnp.float32, -bound, bound)
        w_p = jnp.zeros((fan_in_p, fan_out_p), jnp.float32).at[:fan_in, :fan_out].set(w)
        b_p = jnp.zeros((1, fan_out_p), jnp.float32).at[0, :fan_out].set(b)
        return w_p.astype(jnp.bfloat16), b_p

    w_in, b_in = linear(keys[0], keys[1], INPUT_SIZE, HIDDEN_SIZE, IN_P, HID_P)
    w1, b1 = linear(keys[2], keys[3], HIDDEN_SIZE, HIDDEN_SIZE, HID_P, HID_P)
    w2, b2 = linear(keys[4], keys[5], HIDDEN_SIZE, HIDDEN_SIZE, HID_P, HID_P)
    w_out, b_out = linear(keys[6], keys[7], HIDDEN_SIZE, NUM_CLASSES, HID_P, OUT_P)

    # bake the padded-class mask into the output bias (padded w_out columns are zero)
    b_out = b_out.at[0, NUM_CLASSES:].set(NEG_INF)

    # BatchNorm1d affine: gamma=1 on real channels, 0 on padded channels; beta=0.
    gamma = jnp.zeros((1, HID_P), jnp.float32).at[0, :HIDDEN_SIZE].set(1.0)
    beta = jnp.zeros((1, HID_P), jnp.float32)

    return dict(w_in=w_in, b_in=b_in,
                w1=w1, b1=b1, g1=gamma, be1=beta,
                w2=w2, b2=b2, g2=gamma, be2=beta,
                w_out=w_out, b_out=b_out)


def _ref_forward(x, params):
    """Pure-JAX reference (same bf16 matmul operands, f32 accumulation, two-pass BN var)."""
    B = x.shape[0]
    xp = jnp.zeros((B, IN_P), jnp.float32).at[:, :INPUT_SIZE].set(x)

    def lin(h, wk, bk):
        y = jnp.dot(h.astype(jnp.bfloat16), params[wk],
                    preferred_element_type=jnp.float32) + params[bk]
        return jnp.maximum(y, 0.0)

    h = lin(xp, "w_in", "b_in")
    for wk, bk, gk, bek in (("w1", "b1", "g1", "be1"), ("w2", "b2", "g2", "be2")):
        h = lin(h, wk, bk)
        mean = jnp.mean(h, axis=0, keepdims=True)
        var = jnp.mean((h - mean) ** 2, axis=0, keepdims=True)
        h = (h - mean) * lax.rsqrt(var + BN_EPS) * params[gk] + params[bek]
    logits = (jnp.dot(h.astype(jnp.bfloat16), params["w_out"],
                      preferred_element_type=jnp.float32) + params["b_out"])[:, :NUM_CLASSES]
    return jax.nn.softmax(logits, axis=1)


# --------------------------------------------------------------------------- test
if __name__ == "__main__":
    key = jax.random.PRNGKey(0)
    k_x1, k_x2, k_p = jax.random.split(key, 3)
    params = init_params(k_p)

    # small batch -> fused single-tile path
    x_small = jax.random.normal(k_x1, (16, INPUT_SIZE), jnp.float32)
    out_small = jax.block_until_ready(neural_net_forward(x_small, params))
    assert out_small.shape == (16, NUM_CLASSES)
    assert bool(jnp.all(jnp.abs(jnp.sum(out_small, axis=1) - 1.0) < 5e-3))
    assert bool(jnp.all(jnp.abs(out_small - _ref_forward(x_small, params)) < 3e-2))

    # larger batch -> 3-phase batch-tiled path (2 tiles of 256, last tile row-padded)
    x_big = jax.random.normal(k_x2, (300, INPUT_SIZE), jnp.float32)
    out_big = jax.block_until_ready(neural_net_forward(x_big, params))
    assert out_big.shape == (300, NUM_CLASSES)
    assert bool(jnp.all(jnp.abs(jnp.sum(out_big, axis=1) - 1.0) < 5e-3))
    assert bool(jnp.all(jnp.abs(out_big - _ref_forward(x_big, params)) < 3e-2))

    print("KERNEL_OK")
</pallas_src>

<mosaic_0001>
module attributes {stable_mosaic.version = 11 : i64} {
  func.func @fused_kernel(%arg0: memref<16x896xbf16, #tpu.memory_space<vmem>>, %arg1: memref<896x512xbf16, #tpu.memory_space<vmem>>, %arg2: memref<1x512xf32, #tpu.memory_space<vmem>>, %arg3: memref<512x512xbf16, #tpu.memory_space<vmem>>, %arg4: memref<1x512xf32, #tpu.memory_space<vmem>>, %arg5: memref<1x512xf32, #tpu.memory_space<vmem>>, %arg6: memref<1x512xf32, #tpu.memory_space<vmem>>, %arg7: memref<512x512xbf16, #tpu.memory_space<vmem>>, %arg8: memref<1x512xf32, #tpu.memory_space<vmem>>, %arg9: memref<1x512xf32, #tpu.memory_space<vmem>>, %arg10: memref<1x512xf32, #tpu.memory_space<vmem>>, %arg11: memref<512x128xbf16, #tpu.memory_space<vmem>>, %arg12: memref<1x128xf32, #tpu.memory_space<vmem>>, %arg13: memref<16x128xf32, #tpu.memory_space<vmem>>) attributes {dimension_semantics = [], scalar_prefetch = 0 : i64, scratch_operands = 0 : i64, tpu.core_type = #tpu.core_type<tc>} {
    %c0 = arith.constant 0 : index
    %c0_0 = arith.constant 0 : index
    %0 = vector.load %arg0[%c0, %c0_0] : memref<16x896xbf16, #tpu.memory_space<vmem>>, vector<16x896xbf16>
    %c0_1 = arith.constant 0 : index
    %c0_2 = arith.constant 0 : index
    %1 = vector.load %arg1[%c0_1, %c0_2] : memref<896x512xbf16, #tpu.memory_space<vmem>>, vector<896x512xbf16>
    %cst = arith.constant dense<0.000000e+00> : vector<16x512xf32>
    %2 = tpu.matmul %0, %1, %cst {dimension_numbers = #tpu.dot_dimension_numbers<[1], [0], [0], [1], [0, 0, 1, 1], [], []>} : vector<16x896xbf16>, vector<896x512xbf16>, vector<16x512xf32> -> vector<16x512xf32>
    %c0_3 = arith.constant 0 : index
    %c0_4 = arith.constant 0 : index
    %3 = vector.load %arg2[%c0_3, %c0_4] : memref<1x512xf32, #tpu.memory_space<vmem>>, vector<1x512xf32>
    %4 = vector.broadcast %3 : vector<1x512xf32> to vector<16x512xf32>
    %5 = arith.addf %2, %4 : vector<16x512xf32>
    %cst_5 = arith.constant 0.000000e+00 : f32
    %6 = vector.broadcast %cst_5 : f32 to vector<16x512xf32>
    %7 = arith.maximumf %5, %6 : vector<16x512xf32>
    %8 = arith.truncf %7 : vector<16x512xf32> to vector<16x512xbf16>
    %c0_6 = arith.constant 0 : index
    %c0_7 = arith.constant 0 : index
    %9 = vector.load %arg3[%c0_6, %c0_7] : memref<512x512xbf16, #tpu.memory_space<vmem>>, vector<512x512xbf16>
    %cst_8 = arith.constant dense<0.000000e+00> : vector<16x512xf32>
    %10 = tpu.matmul %8, %9, %cst_8 {dimension_numbers = #tpu.dot_dimension_numbers<[1], [0], [0], [1], [0, 0, 1, 1], [], []>} : vector<16x512xbf16>, vector<512x512xbf16>, vector<16x512xf32> -> vector<16x512xf32>
    %c0_9 = arith.constant 0 : index
    %c0_10 = arith.constant 0 : index
    %11 = vector.load %arg4[%c0_9, %c0_10] : memref<1x512xf32, #tpu.memory_space<vmem>>, vector<1x512xf32>
    %12 = vector.broadcast %11 : vector<1x512xf32> to vector<16x512xf32>
    %13 = arith.addf %10, %12 : vector<16x512xf32>
    %cst_11 = arith.constant 0.000000e+00 : f32
    %14 = vector.broadcast %cst_11 : f32 to vector<16x512xf32>
    %15 = arith.maximumf %13, %14 : vector<16x512xf32>
    %cst_12 = arith.constant dense<0.000000e+00> : vector<512xf32>
    %16 = vector.multi_reduction <add>, %15, %cst_12 [0] : vector<16x512xf32> to vector<512xf32>
    %17 = vector.shape_cast %16 : vector<512xf32> to vector<1x512xf32>
    %18 = arith.mulf %15, %15 : vector<16x512xf32>
    %cst_13 = arith.constant dense<0.000000e+00> : vector<512xf32>
    %19 = vector.multi_reduction <add>, %18, %cst_13 [0] : vector<16x512xf32> to vector<512xf32>
    %20 = vector.shape_cast %19 : vector<512xf32> to vector<1x512xf32>
    %cst_14 = arith.constant 6.250000e-02 : f32
    %21 = vector.broadcast %cst_14 : f32 to vector<1x512xf32>
    %22 = arith.mulf %17, %21 : vector<1x512xf32>
    %cst_15 = arith.constant 6.250000e-02 : f32
    %23 = vector.broadcast %cst_15 : f32 to vector<1x512xf32>
    %24 = arith.mulf %20, %23 : vector<1x512xf32>
    %25 = arith.mulf %22, %22 : vector<1x512xf32>
    %26 = arith.subf %24, %25 : vector<1x512xf32>
    %c0_16 = arith.constant 0 : index
    %c0_17 = arith.constant 0 : index
    %27 = vector.load %arg5[%c0_16, %c0_17] : memref<1x512xf32, #tpu.memory_space<vmem>>, vector<1x512xf32>
    %cst_18 = arith.constant 9.99999974E-6 : f32
    %28 = vector.broadcast %cst_18 : f32 to vector<1x512xf32>
    %29 = arith.addf %26, %28 : vector<1x512xf32>
    %30 = math.rsqrt %29 : vector<1x512xf32>
    %31 = arith.mulf %27, %30 : vector<1x512xf32>
    %c0_19 = arith.constant 0 : index
    %c0_20 = arith.constant 0 : index
    %32 = vector.load %arg6[%c0_19, %c0_20] : memref<1x512xf32, #tpu.memory_space<vmem>>, vector<1x512xf32>
    %33 = arith.mulf %22, %31 : vector<1x512xf32>
    %34 = arith.subf %32, %33 : vector<1x512xf32>
    %35 = vector.broadcast %31 : vector<1x512xf32> to vector<16x512xf32>
    %36 = arith.mulf %15, %35 : vector<16x512xf32>
    %37 = vector.broadcast %34 : vector<1x512xf32> to vector<16x512xf32>
    %38 = arith.addf %36, %37 : vector<16x512xf32>
    %39 = arith.truncf %38 : vector<16x512xf32> to vector<16x512xbf16>
    %c0_21 = arith.constant 0 : index
    %c0_22 = arith.constant 0 : index
    %40 = vector.load %arg7[%c0_21, %c0_22] : memref<512x512xbf16, #tpu.memory_space<vmem>>, vector<512x512xbf16>
    %cst_23 = arith.constant dense<0.000000e+00> : vector<16x512xf32>
    %41 = tpu.matmul %39, %40, %cst_23 {dimension_numbers = #tpu.dot_dimension_numbers<[1], [0], [0], [1], [0, 0, 1, 1], [], []>} : vector<16x512xbf16>, vector<512x512xbf16>, vector<16x512xf32> -> vector<16x512xf32>
    %c0_24 = arith.constant 0 : index
    %c0_25 = arith.constant 0 : index
    %42 = vector.load %arg8[%c0_24, %c0_25] : memref<1x512xf32, #tpu.memory_space<vmem>>, vector<1x512xf32>
    %43 = vector.broadcast %42 : vector<1x512xf32> to vector<16x512xf32>
    %44 = arith.addf %41, %43 : vector<16x512xf32>
    %cst_26 = arith.constant 0.000000e+00 : f32
    %45 = vector.broadcast %cst_26 : f32 to vector<16x512xf32>
    %46 = arith.maximumf %44, %45 : vector<16x512xf32>
    %cst_27 = arith.constant dense<0.000000e+00> : vector<512xf32>
    %47 = vector.multi_reduction <add>, %46, %cst_27 [0] : vector<16x512xf32> to vector<512xf32>
    %48 = vector.shape_cast %47 : vector<512xf32> to vector<1x512xf32>
    %49 = arith.mulf %46, %46 : vector<16x512xf32>
    %cst_28 = arith.constant dense<0.000000e+00> : vector<512xf32>
    %50 = vector.multi_reduction <add>, %49, %cst_28 [0] : vector<16x512xf32> to vector<512xf32>
    %51 = vector.shape_cast %50 : vector<512xf32> to vector<1x512xf32>
    %cst_29 = arith.constant 6.250000e-02 : f32
    %52 = vector.broadcast %cst_29 : f32 to vector<1x512xf32>
    %53 = arith.mulf %48, %52 : vector<1x512xf32>
    %cst_30 = arith.constant 6.250000e-02 : f32
    %54 = vector.broadcast %cst_30 : f32 to vector<1x512xf32>
    %55 = arith.mulf %51, %54 : vector<1x512xf32>
    %56 = arith.mulf %53, %53 : vector<1x512xf32>
    %57 = arith.subf %55, %56 : vector<1x512xf32>
    %c0_31 = arith.constant 0 : index
    %c0_32 = arith.constant 0 : index
    %58 = vector.load %arg9[%c0_31, %c0_32] : memref<1x512xf32, #tpu.memory_space<vmem>>, vector<1x512xf32>
    %cst_33 = arith.constant 9.99999974E-6 : f32
    %59 = vector.broadcast %cst_33 : f32 to vector<1x512xf32>
    %60 = arith.addf %57, %59 : vector<1x512xf32>
    %61 = math.rsqrt %60 : vector<1x512xf32>
    %62 = arith.mulf %58, %61 : vector<1x512xf32>
    %c0_34 = arith.constant 0 : index
    %c0_35 = arith.constant 0 : index
    %63 = vector.load %arg10[%c0_34, %c0_35] : memref<1x512xf32, #tpu.memory_space<vmem>>, vector<1x512xf32>
    %64 = arith.mulf %53, %62 : vector<1x512xf32>
    %65 = arith.subf %63, %64 : vector<1x512xf32>
    %66 = vector.broadcast %62 : vector<1x512xf32> to vector<16x512xf32>
    %67 = arith.mulf %46, %66 : vector<16x512xf32>
    %68 = vector.broadcast %65 : vector<1x512xf32> to vector<16x512xf32>
    %69 = arith.addf %67, %68 : vector<16x512xf32>
    %70 = arith.truncf %69 : vector<16x512xf32> to vector<16x512xbf16>
    %c0_36 = arith.constant 0 : index
    %c0_37 = arith.constant 0 : index
    %71 = vector.load %arg11[%c0_36, %c0_37] : memref<512x128xbf16, #tpu.memory_space<vmem>>, vector<512x128xbf16>
    %cst_38 = arith.constant dense<0.000000e+00> : vector<16x128xf32>
    %72 = tpu.matmul %70, %71, %cst_38 {dimension_numbers = #tpu.dot_dimension_numbers<[1], [0], [0], [1], [0, 0, 1, 1], [], []>} : vector<16x512xbf16>, vector<512x128xbf16>, vector<16x128xf32> -> vector<16x128xf32>
    %c0_39 = arith.constant 0 : index
    %c0_40 = arith.constant 0 : index
    %73 = vector.load %arg12[%c0_39, %c0_40] : memref<1x128xf32, #tpu.memory_space<vmem>>, vector<1x128xf32>
    %74 = vector.broadcast %73 : vector<1x128xf32> to vector<16x128xf32>
    %75 = arith.addf %72, %74 : vector<16x128xf32>
    %cst_41 = arith.constant dense<0xFF800000> : vector<16xf32>
    %76 = vector.multi_reduction <maximumf>, %75, %cst_41 [1] : vector<16x128xf32> to vector<16xf32>
    %77 = vector.shape_cast %76 : vector<16xf32> to vector<16x1xf32>
    %78 = vector.broadcast %77 : vector<16x1xf32> to vector<16x128xf32>
    %79 = arith.subf %75, %78 : vector<16x128xf32>
    %80 = math.exp %79 : vector<16x128xf32>
    %cst_42 = arith.constant dense<0.000000e+00> : vector<16xf32>
    %81 = vector.multi_reduction <add>, %80, %cst_42 [1] : vector<16x128xf32> to vector<16xf32>
    %82 = vector.shape_cast %81 : vector<16xf32> to vector<16x1xf32>
    %83 = tpu.reciprocal %82 {approx = true} : vector<16x1xf32> -> vector<16x1xf32>
    %84 = vector.broadcast %83 : vector<16x1xf32> to vector<16x128xf32>
    %85 = arith.mulf %80, %84 : vector<16x128xf32>
    %c0_43 = arith.constant 0 : index
    %c0_44 = arith.constant 0 : index
    %86 = vector.load %arg13[%c0_43, %c0_44] : memref<16x128xf32, #tpu.memory_space<vmem>>, vector<16x128xf32>
    tpu.vector_store %arg13[%c0_43, %c0_44], %85 {strides = array<i32>} : memref<16x128xf32, #tpu.memory_space<vmem>>, vector<16x128xf32>,
    return
  }
}

</mosaic_0001>

<bundles_post_ra>
// kernel: tpu_custom_call.1
= control target key start
LH: loop header
LB: loop body
LE: loop exit
PB: predicated region body
PF: predicated region fallthrough
CT: control target
= control target key end

     0   :  { %18 = vsyncpa [#allocation3], 0  ;;  %s6558_s0 = inlined_call_operand.hbm [shape: bf16[16,896], index: 0, kind: input, shape index: {}]   ;;  %s6559_s1 = inlined_call_operand.hbm [shape: bf16[896,512], index: 1, kind: input, shape index: {}]   ;;  %s6560_s2 = inlined_call_operand.vmem [shape: f32[1,512], index: 2, kind: input, shape index: {}]   ;;  %s6561_s3 = inlined_call_operand.hbm [shape: bf16[512,512], index: 3, kind: input, shape index: {}]   ;;  %s6562_s4 = inlined_call_operand.vmem [shape: f32[1,512], index: 4, kind: input, shape index: {}]   ;;  %s6563_s5 = inlined_call_operand.vmem [shape: f32[1,512], index: 5, kind: input, shape index: {}]   ;;  %s6564_s6 = inlined_call_operand.vmem [shape: f32[1,512], index: 6, kind: input, shape index: {}]   ;;  %s6565_s7 = inlined_call_operand.hbm [shape: bf16[512,512], index: 7, kind: input, shape index: {}]   ;;  %s6566_s8 = inlined_call_operand.vmem [shape: f32[1,512], index: 8, kind: input, shape index: {}]   ;;  %s6567_s9 = inlined_call_operand.vmem [shape: f32[1,512], index: 9, kind: input, shape index: {}]   ;;  %s6568_s10 = inlined_call_operand.vmem [shape: f32[1,512], index: 10, kind: input, shape index: {}]   ;;  %s6569_s11 = inlined_call_operand.hbm [shape: bf16[512,128], index: 11, kind: input, shape index: {}]   ;;  %s6570_s12 = inlined_call_operand.vmem [shape: f32[1,128], index: 12, kind: input, shape index: {}]   ;;  %s6571_s13 = inlined_call_operand.hbm [shape: f32[16,128], index: 13, kind: output, shape index: {}]  }
   0x1   :  { %19 = vsyncpa [#allocation6], 0 }
   0x2   :  { %20 = vsyncpa [#allocation9], 0 }
   0x3   :  { %21 = vsyncpa [#allocation4], 0  ;;  %s6206_s25 = smov [#allocation5]   ;;  %s6066_s29 = scalar_lea.hbm %s6559_s1, 28672 }
   0x4   :  { %s39_s26 = sshll.u32 %s6206_s25, 4  ;;  %p6067_p0 = scmp.ne.s32.totalorder %s6559_s1, %s6066_s29  ;;  %s40_s26 = int_to_ptr.vmem [resolvable:$true] %s39_s26 }
   0x5   :  { %p6070_p1 = scmp.lt.u32.totalorder %s6066_s29, %s6559_s1 }
   0x7   :  { %p6072_p2 = pnand %p6070_p1, %p6067_p0 }
   0x9   :  { %6075 = shalt.err (!%p6072_p2)
}
   0xa   :  { %s6076_s17 = scalar_lea.vmem %s40_s26, 28672  ;;  %p6081_p4 = scmp.lt.s32.totalorder %s40_s26, %s40_s26 }
   0xb   :  { %p6077_p3 = scmp.ne.s32.totalorder %s40_s26, %s6076_s17  ;;  %p6082_p5 = scmp.lt.s32.totalorder %s6076_s17, %s6076_s17 }
   0xd   :  { %p6083_p6 = por %p6082_p5, %p6081_p4 }
   0xf   :  { %p6084_p7 = pnand %p6083_p6, %p6077_p3 }
  0x11   :  { %6087 = shalt.err (!%p6084_p7)
}
  0x12   :  { %s6207_s18 = smov 256   ;;  %s6208_s19 = smov 16  }
  0x13   :  { %45 = dma.hbm_to_vmem [thread:$0]  %s6559_s1, 28672, %s40_s26, [#allocation6], %s6207_s18, %s6207_s18, %s6208_s19  }
  0x14   :  { %s6209_s22 = smov [#allocation8]   ;;  %s6210_s24 = smov [#allocation2]  }
  0x15   :  { %s71_s23 = sshll.u32 %s6209_s22, 4  ;;  %s27_s25 = sshll.u32 %s6210_s24, 4  ;;  %s72_s23 = int_to_ptr.vmem [resolvable:$true] %s71_s23  ;;  %s28_s25 = int_to_ptr.vmem [resolvable:$true] %s27_s25 }
  0x16   :  { %s6088_s29 = scalar_lea.hbm %s6565_s7, 16384 }
  0x17   :  { %p6089_p8 = scmp.ne.s32.totalorder %s6565_s7, %s6088_s29  ;;  %p6092_p9 = scmp.lt.u32.totalorder %s6088_s29, %s6565_s7 }
  0x19   :  { %p6094_p10 = pnand %p6092_p9, %p6089_p8 }
  0x1b   :  { %6097 = shalt.err (!%p6094_p10)
}
  0x1c   :  { %s6098_s1 = scalar_lea.vmem %s72_s23, 16384  ;;  %p6103_p12 = scmp.lt.s32.totalorder %s72_s23, %s72_s23 }
  0x1d   :  { %p6099_p11 = scmp.ne.s32.totalorder %s72_s23, %s6098_s1  ;;  %p6104_p13 = scmp.lt.s32.totalorder %s6098_s1, %s6098_s1 }
  0x1f   :  { %p6105_p0 = por %p6104_p13, %p6103_p12 }
  0x21   :  { %p6106_p1 = pnand %p6105_p0, %p6099_p11 }
  0x23   :  { %6109 = shalt.err (!%p6106_p1)
}
  0x24   :  { %77 = dma.hbm_to_vmem [thread:$0]  %s6565_s7, 16384, %s72_s23, [#allocation9], %s6207_s18, %s6207_s18, %s6208_s19  }
  0x25   :  { %s6110_s22 = scalar_lea.hbm %s6558_s0, 896 }
  0x26   :  { %p6111_p2 = scmp.ne.s32.totalorder %s6558_s0, %s6110_s22  ;;  %p6114_p3 = scmp.lt.u32.totalorder %s6110_s22, %s6558_s0 }
  0x28   :  { %p6116_p4 = pnand %p6114_p3, %p6111_p2 }
  0x2a   :  { %6119 = shalt.err (!%p6116_p4)
}
  0x2b   :  { %s6120_s30 = scalar_lea.vmem %s28_s25, 896  ;;  %p6125_p6 = scmp.lt.s32.totalorder %s28_s25, %s28_s25 }
  0x2c   :  { %p6121_p5 = scmp.ne.s32.totalorder %s28_s25, %s6120_s30  ;;  %p6126_p7 = scmp.lt.s32.totalorder %s6120_s30, %s6120_s30 }
  0x2e   :  { %p6127_p8 = por %p6126_p7, %p6125_p6 }
  0x30   :  { %p6128_p9 = pnand %p6127_p8, %p6121_p5 }
  0x32   :  { %6131 = shalt.err (!%p6128_p9)
}
  0x33   :  { %s6211_s7 = smov 448   ;;  %s6212_s23 = smov 28  }
  0x34   :  { %33 = dma.hbm_to_vmem [thread:$0]  %s6558_s0, 896, %s28_s25, [#allocation3], %s6211_s7, %s6211_s7, %s6212_s23  }
  0x35   :  { %s6213_s16 = smov [#allocation7]   ;;  %s6214_s26 = smov [#allocation10]  }
  0x36   :  { %s53_s1 = sshll.u32 %s6213_s16, 4  ;;  %s89_s17 = sshll.u32 %s6214_s26, 4  ;;  %s54_s1 = int_to_ptr.vmem [resolvable:$true] %s53_s1  ;;  %s90_s17 = int_to_ptr.vmem [resolvable:$true] %s89_s17 }
  0x37   :  { %s6132_s22 = scalar_lea.hbm %s6561_s3, 16384 }
  0x38   :  { %p6133_p10 = scmp.ne.s32.totalorder %s6561_s3, %s6132_s22  ;;  %p6136_p11 = scmp.lt.u32.totalorder %s6132_s22, %s6561_s3 }
  0x3a   :  { %p6138_p12 = pnand %p6136_p11, %p6133_p10 }
  0x3c   :  { %6141 = shalt.err (!%p6138_p12)
}
  0x3d   :  { %s6142_s0 = scalar_lea.vmem %s54_s1, 16384  ;;  %p6147_p0 = scmp.lt.s32.totalorder %s54_s1, %s54_s1 }
  0x3e   :  { %p6143_p13 = scmp.ne.s32.totalorder %s54_s1, %s6142_s0  ;;  %p6148_p1 = scmp.lt.s32.totalorder %s6142_s0, %s6142_s0 }
  0x40   :  { %p6149_p2 = por %p6148_p1, %p6147_p0 }
  0x42   :  { %p6150_p3 = pnand %p6149_p2, %p6143_p13 }
  0x44   :  { %6153 = shalt.err (!%p6150_p3)
}
  0x45   :  { %59 = dma.hbm_to_vmem [thread:$0]  %s6561_s3, 16384, %s54_s1, [#allocation6], %s6207_s18, %s6207_s18, %s6208_s19  }
  0x46   :  { %s6154_s14 = scalar_lea.hbm %s6569_s11, 4096 }
  0x47   :  { %p6155_p4 = scmp.ne.s32.totalorder %s6569_s11, %s6154_s14  ;;  %p6158_p5 = scmp.lt.u32.totalorder %s6154_s14, %s6569_s11 }
  0x49   :  { %p6160_p6 = pnand %p6158_p5, %p6155_p4 }
  0x4b   :  { %6163 = shalt.err (!%p6160_p6)
}
  0x4c   :  { %s6164_s21 = scalar_lea.vmem %s90_s17, 4096  ;;  %p6169_p8 = scmp.lt.s32.totalorder %s90_s17, %s90_s17 }
  0x4d   :  { %p6165_p7 = scmp.ne.s32.totalorder %s90_s17, %s6164_s21  ;;  %p6170_p9 = scmp.lt.s32.totalorder %s6164_s21, %s6164_s21 }
  0x4f   :  { %p6171_p10 = por %p6170_p9, %p6169_p8 }
  0x51   :  { %p6172_p11 = pnand %p6171_p10, %p6165_p7 }
  0x53   :  { %6175 = shalt.err (!%p6172_p11)
}
  0x54   :  { %s6215_s3 = smov 64   ;;  %s6216_s18 = smov 4  }
  0x55   :  { %95 = dma.hbm_to_vmem [thread:$0]  %s6569_s11, 4096, %s90_s17, [#allocation9], %s6215_s3, %s6215_s3, %s6216_s18  }
  0x56   :  { %6198 = dma.done.wait [#allocation3], 896  }
  0x57   :  { %6199 = vsyncadd [#allocation3], 4294966400 }
  0x58   :  { %6200 = dma.done.wait [#allocation6], 45056  }
  0x59   :  { %6201 = vsyncadd [#allocation6], 4294922240 }
  0x5a   :  { %6202 = dma.done.wait [#allocation9], 20480  }
  0x5b   :  { %6203 = vsyncadd [#allocation9], 4294946816  ;;  %v5280_v0 = vld [vmem:[#allocation5 + $0x4] ss:$16 sps:$4 sm:$0xff]   ;;  %v5282_v1 = vld [vmem:[#allocation5 + $0xc] ss:$16 sps:$4 sm:$0xff]  }
  0x5c   :  { %1524 = vmatprep.subr.bf16.mxu0 %v5280_v0  ;;  %v5284_v2 = vld [vmem:[#allocation5] ss:$16 sps:$4 sm:$0xff]   ;;  %v5285_v3 = vld [vmem:[#allocation5 + $0x8] ss:$16 sps:$4 sm:$0xff]   ;;  %1696 = vmatprep.subr.bf16.mxu1 %v5282_v1  ;;  %v5286_v4 = vld [vmem:[#allocation5 + $0x24] ss:$16 sps:$4 sm:$0xff]  }
  0x5d   :  { %1525 = vmatpush1.bf16.msra.mxu0 %v5284_v2  ;;  %1697 = vmatpush1.bf16.msra.mxu1 %v5285_v3  ;;  %v5288_v5 = vld [vmem:[#allocation5 + $0x2c] ss:$16 sps:$4 sm:$0xff]   ;;  %v5290_v6 = vld [vmem:[#allocation5 + $0x20] ss:$16 sps:$4 sm:$0xff]   ;;  %v5291_v7 = vld [vmem:[#allocation5 + $0x28] ss:$16 sps:$4 sm:$0xff]  }
  0x5e   :  { %1526 = vmatprep.subr.bf16.mxu0 %v5286_v4  ;;  %1698 = vmatprep.subr.bf16.mxu1 %v5288_v5  ;;  %v5292_v8 = vld [vmem:[#allocation5 + $0x44] ss:$16 sps:$4 sm:$0xff]   ;;  %v5294_v9 = vld [vmem:[#allocation5 + $0x4c] ss:$16 sps:$4 sm:$0xff]   ;;  %v5296_v10 = vld [vmem:[#allocation5 + $0x40] ss:$16 sps:$4 sm:$0xff]  }
  0x5f   :  { %v5297_v11 = vld [vmem:[#allocation5 + $0x48] ss:$16 sps:$4 sm:$0xff]   ;;  %v5298_v12 = vld [vmem:[#allocation5 + $0x64] ss:$16 sps:$4 sm:$0xff]   ;;  %v5300_v13 = vld [vmem:[#allocation5 + $0x6c] ss:$16 sps:$4 sm:$0xff]  }
  0x60   :  { %v5302_v14 = vld [vmem:[#allocation5 + $0x60] ss:$16 sps:$4 sm:$0xff]   ;;  %v5303_v15 = vld [vmem:[#allocation5 + $0x68] ss:$16 sps:$4 sm:$0xff]   ;;  %v5304_v16 = vld [vmem:[#allocation5 + $0x84] ss:$16 sps:$4 sm:$0xff]  }
  0x61   :  { %1527 = vmatpush1.bf16.msra.mxu0 %v5290_v6  ;;  %1699 = vmatpush1.bf16.msra.mxu1 %v5291_v7  ;;  %v5306_v17 = vld [vmem:[#allocation5 + $0x8c] ss:$16 sps:$4 sm:$0xff]   ;;  %v5308_v18 = vld [vmem:[#allocation5 + $0x80] ss:$16 sps:$4 sm:$0xff]   ;;  %v5309_v19 = vld [vmem:[#allocation5 + $0x88] ss:$16 sps:$4 sm:$0xff]  }
  0x62   :  { %1528 = vmatprep.subr.bf16.mxu0 %v5292_v8  ;;  %1700 = vmatprep.subr.bf16.mxu1 %v5294_v9  ;;  %v5310_v20 = vld [vmem:[#allocation5 + $0xa4] ss:$16 sps:$4 sm:$0xff]   ;;  %v5312_v21 = vld [vmem:[#allocation5 + $0xac] ss:$16 sps:$4 sm:$0xff]   ;;  %v5314_v22 = vld [vmem:[#allocation5 + $0xa0] ss:$16 sps:$4 sm:$0xff]  }
  0x63   :  { %v5315_v23 = vld [vmem:[#allocation5 + $0xa8] ss:$16 sps:$4 sm:$0xff]   ;;  %v5316_v24 = vld [vmem:[#allocation5 + $0xc4] ss:$16 sps:$4 sm:$0xff]   ;;  %v5318_v25 = vld [vmem:[#allocation5 + $0xcc] ss:$16 sps:$4 sm:$0xff]  }
  0x64   :  { %v5320_v26 = vld [vmem:[#allocation5 + $0xc0] ss:$16 sps:$4 sm:$0xff]   ;;  %v5321_v27 = vld [vmem:[#allocation5 + $0xc8] ss:$16 sps:$4 sm:$0xff]   ;;  %v5322_v28 = vld [vmem:[#allocation5 + $0xe4] ss:$16 sps:$4 sm:$0xff]  }
  0x65   :  { %1529 = vmatpush1.bf16.msra.mxu0 %v5296_v10  ;;  %1701 = vmatpush1.bf16.msra.mxu1 %v5297_v11  ;;  %v5324_v29 = vld [vmem:[#allocation5 + $0xec] ss:$16 sps:$4 sm:$0xff]   ;;  %v5326_v30 = vld [vmem:[#allocation5 + $0xe0] ss:$16 sps:$4 sm:$0xff]   ;;  %v5327_v31 = vld [vmem:[#allocation5 + $0xe8] ss:$16 sps:$4 sm:$0xff]  }
  0x66   :  { %1530 = vmatprep.subr.bf16.mxu0 %v5298_v12  ;;  %1702 = vmatprep.subr.bf16.mxu1 %v5300_v13  ;;  %v5328_v32 = vld [vmem:[#allocation5 + $0x104] ss:$16 sps:$4 sm:$0xff]   ;;  %v5330_v33 = vld [vmem:[#allocation5 + $0x10c] ss:$16 sps:$4 sm:$0xff]   ;;  %v5332_v34 = vld [vmem:[#allocation5 + $0x100] ss:$16 sps:$4 sm:$0xff]  }
  0x67   :  { %v5333_v35 = vld [vmem:[#allocation5 + $0x108] ss:$16 sps:$4 sm:$0xff]   ;;  %v5334_v36 = vld [vmem:[#allocation5 + $0x124] ss:$16 sps:$4 sm:$0xff]   ;;  %v5336_v37 = vld [vmem:[#allocation5 + $0x12c] ss:$16 sps:$4 sm:$0xff]  }
  0x68   :  { %v5338_v38 = vld [vmem:[#allocation5 + $0x120] ss:$16 sps:$4 sm:$0xff]   ;;  %v5339_v39 = vld [vmem:[#allocation5 + $0x128] ss:$16 sps:$4 sm:$0xff]   ;;  %v5340_v40 = vld [vmem:[#allocation5 + $0x144] ss:$16 sps:$4 sm:$0xff]  }
  0x69   :  { %1531 = vmatpush1.bf16.msra.mxu0 %v5302_v14  ;;  %1703 = vmatpush1.bf16.msra.mxu1 %v5303_v15  ;;  %v5342_v41 = vld [vmem:[#allocation5 + $0x14c] ss:$16 sps:$4 sm:$0xff]   ;;  %v5344_v42 = vld [vmem:[#allocation5 + $0x140] ss:$16 sps:$4 sm:$0xff]   ;;  %v5345_v43 = vld [vmem:[#allocation5 + $0x148] ss:$16 sps:$4 sm:$0xff]  }
  0x6a   :  { %1532 = vmatprep.subr.bf16.mxu0 %v5304_v16  ;;  %1704 = vmatprep.subr.bf16.mxu1 %v5306_v17  ;;  %v5346_v44 = vld [vmem:[#allocation5 + $0x164] ss:$16 sps:$4 sm:$0xff]   ;;  %v5348_v45 = vld [vmem:[#allocation5 + $0x16c] ss:$16 sps:$4 sm:$0xff]   ;;  %v5350_v46 = vld [vmem:[#allocation5 + $0x160] ss:$16 sps:$4 sm:$0xff]  }
  0x6b   :  { %v5351_v47 = vld [vmem:[#allocation5 + $0x168] ss:$16 sps:$4 sm:$0xff]   ;;  %v5352_v49 = vld [vmem:[#allocation5 + $0x184] ss:$16 sps:$4 sm:$0xff]   ;;  %v5354_v50 = vld [vmem:[#allocation5 + $0x18c] ss:$16 sps:$4 sm:$0xff]  }
  0x6c   :  { %v5378_v48 = vld [vmem:[#allocation2 + $0x4] ss:$28 sps:$4 sm:$0xff]   ;;  %v5356_v51 = vld [vmem:[#allocation5 + $0x180] ss:$16 sps:$4 sm:$0xff]   ;;  %v5358_v53 = vld [vmem:[#allocation5 + $0x1a4] ss:$16 sps:$4 sm:$0xff]  }
  0x6d   :  { %1533 = vmatpush1.bf16.msra.mxu0 %v5308_v18  ;;  %1705 = vmatpush1.bf16.msra.mxu1 %v5309_v19  ;;  %v5357_v52 = vld [vmem:[#allocation5 + $0x188] ss:$16 sps:$4 sm:$0xff]   ;;  %v5360_v54 = vld [vmem:[#allocation5 + $0x1ac] ss:$16 sps:$4 sm:$0xff]   ;;  %v5362_v55 = vld [vmem:[#allocation5 + $0x1a0] ss:$16 sps:$4 sm:$0xff]  }
  0x6e   :  { %1534 = vmatprep.subr.bf16.mxu0 %v5310_v20  ;;  %1706 = vmatprep.subr.bf16.mxu1 %v5312_v21  ;;  %v5363_v56 = vld [vmem:[#allocation5 + $0x1a8] ss:$16 sps:$4 sm:$0xff]   ;;  %v5364_v57 = vld [vmem:[#allocation5 + $0x1c4] ss:$16 sps:$4 sm:$0xff]   ;;  %v5366_v58 = vld [vmem:[#allocation5 + $0x1cc] ss:$16 sps:$4 sm:$0xff]  }
  0x6f   :  { %1556 = vmatprep.mubr.bf16.mxu0 %v5378_v48  ;;  %1728 = vmatprep.mubr.bf16.mxu1 %v5378_v48  ;;  %v5368_v59 = vld [vmem:[#allocation5 + $0x1c0] ss:$16 sps:$4 sm:$0xff]   ;;  %v5369_v60 = vld [vmem:[#allocation5 + $0x1c8] ss:$16 sps:$4 sm:$0xff]   ;;  %v5370_v61 = vld [vmem:[#allocation5 + $0x1e4] ss:$16 sps:$4 sm:$0xff]  }
  0x70   :  { %v5372_v62 = vld [vmem:[#allocation5 + $0x1ec] ss:$16 sps:$4 sm:$0xff]   ;;  %v5374_v63 = vld [vmem:[#allocation5 + $0x1e0] ss:$16 sps:$4 sm:$0xff]   ;;  %v5375_v0 = vld [vmem:[#allocation5 + $0x1e8] ss:$16 sps:$4 sm:$0xff]  }
  0x71   :  { %1535 = vmatpush1.bf16.msra.mxu0 %v5314_v22  ;;  %1707 = vmatpush1.bf16.msra.mxu1 %v5315_v23  ;;  %v5381_v1 = vld [vmem:[#allocation5 + $0x204] ss:$16 sps:$4 sm:$0xff]   ;;  %v5384_v2 = vld [vmem:[#allocation5 + $0x20c] ss:$16 sps:$4 sm:$0xff]   ;;  %v5379_v4 = vld [vmem:[#allocation5 + $0x200] ss:$16 sps:$4 sm:$0xff]  }
  0x72   :  { %1536 = vmatprep.subr.bf16.mxu0 %v5316_v24  ;;  %1708 = vmatprep.subr.bf16.mxu1 %v5318_v25  ;;  %v5376_v3 = vld [vmem:[#allocation2] ss:$28 sps:$4 sm:$0xff]   ;;  %v5390_v7 = vld [vmem:[#allocation5 + $0x22c] ss:$16 sps:$4 sm:$0xff]   ;;  %v5385_v8 = vld [vmem:[#allocation5 + $0x220] ss:$16 sps:$4 sm:$0xff]  }
  0x73   :  { %v5382_v5 = vld [vmem:[#allocation5 + $0x208] ss:$16 sps:$4 sm:$0xff]   ;;  %v5387_v6 = vld [vmem:[#allocation5 + $0x224] ss:$16 sps:$4 sm:$0xff]   ;;  %v5396_v11 = vld [vmem:[#allocation5 + $0x24c] ss:$16 sps:$4 sm:$0xff]  }
  0x74   :  { %v5388_v9 = vld [vmem:[#allocation5 + $0x228] ss:$16 sps:$4 sm:$0xff]   ;;  %v5393_v10 = vld [vmem:[#allocation5 + $0x244] ss:$16 sps:$4 sm:$0xff]   ;;  %v5391_v12 = vld [vmem:[#allocation5 + $0x240] ss:$16 sps:$4 sm:$0xff]  }
  0x75   :  { %1537 = vmatpush1.bf16.msra.mxu0 %v5320_v26  ;;  %1709 = vmatpush1.bf16.msra.mxu1 %v5321_v27  ;;  %v5394_v13 = vld [vmem:[#allocation5 + $0x248] ss:$16 sps:$4 sm:$0xff]   ;;  %v5399_v14 = vld [vmem:[#allocation5 + $0x264] ss:$16 sps:$4 sm:$0xff]   ;;  %v5402_v15 = vld [vmem:[#allocation5 + $0x26c] ss:$16 sps:$4 sm:$0xff]  }
  0x76   :  { %1538 = vmatprep.subr.bf16.mxu0 %v5322_v28  ;;  %1710 = vmatprep.subr.bf16.mxu1 %v5324_v29  ;;  %v5397_v16 = vld [vmem:[#allocation5 + $0x260] ss:$16 sps:$4 sm:$0xff]   ;;  %v5400_v17 = vld [vmem:[#allocation5 + $0x268] ss:$16 sps:$4 sm:$0xff]   ;;  %v5405_v18 = vld [vmem:[#allocation5 + $0x284] ss:$16 sps:$4 sm:$0xff]  }
  0x77   :  { %v5408_v19 = vld [vmem:[#allocation5 + $0x28c] ss:$16 sps:$4 sm:$0xff]   ;;  %v5403_v20 = vld [vmem:[#allocation5 + $0x280] ss:$16 sps:$4 sm:$0xff]   ;;  %v5406_v21 = vld [vmem:[#allocation5 + $0x288] ss:$16 sps:$4 sm:$0xff]  }
  0x78   :  { %v5411_v22 = vld [vmem:[#allocation5 + $0x2a4] ss:$16 sps:$4 sm:$0xff]   ;;  %v5414_v23 = vld [vmem:[#allocation5 + $0x2ac] ss:$16 sps:$4 sm:$0xff]   ;;  %v5409_v24 = vld [vmem:[#allocation5 + $0x2a0] ss:$16 sps:$4 sm:$0xff]  }
  0x79   :  { %1539 = vmatpush1.bf16.msra.mxu0 %v5326_v30  ;;  %1711 = vmatpush1.bf16.msra.mxu1 %v5327_v31  ;;  %v5412_v25 = vld [vmem:[#allocation5 + $0x2a8] ss:$16 sps:$4 sm:$0xff]   ;;  %v5417_v26 = vld [vmem:[#allocation5 + $0x2c4] ss:$16 sps:$4 sm:$0xff]   ;;  %v5420_v27 = vld [vmem:[#allocation5 + $0x2cc] ss:$16 sps:$4 sm:$0xff]  }
  0x7a   :  { %1540 = vmatprep.subr.bf16.mxu0 %v5328_v32  ;;  %1712 = vmatprep.subr.bf16.mxu1 %v5330_v33  ;;  %v5415_v28 = vld [vmem:[#allocation5 + $0x2c0] ss:$16 sps:$4 sm:$0xff]   ;;  %v5418_v29 = vld [vmem:[#allocation5 + $0x2c8] ss:$16 sps:$4 sm:$0xff]   ;;  %v5423_v31 = vld [vmem:[#allocation5 + $0x2e4] ss:$16 sps:$4 sm:$0xff]  }
  0x7b   :  { %v5477_v30 = vld [vmem:[#allocation2 + $0xc] ss:$28 sps:$4 sm:$0xff]   ;;  %v5426_v32 = vld [vmem:[#allocation5 + $0x2ec] ss:$16 sps:$4 sm:$0xff]  }
  0x7c   :  { %v5421_v33 = vld [vmem:[#allocation5 + $0x2e0] ss:$16 sps:$4 sm:$0xff]   ;;  %v5450_v48 = vld [vmem:[#allocation5 + $0x36c] ss:$16 sps:$4 sm:$0xff]  }
  0x7d   :  { %1541 = vmatpush1.bf16.msra.mxu0 %v5332_v34  ;;  %1713 = vmatpush1.bf16.msra.mxu1 %v5333_v35  ;;  %v5424_v34 = vld [vmem:[#allocation5 + $0x2e8] ss:$16 sps:$4 sm:$0xff]   ;;  %v5429_v35 = vld [vmem:[#allocation5 + $0x304] ss:$16 sps:$4 sm:$0xff]  }
  0x7e   :  { %1542 = vmatprep.subr.bf16.mxu0 %v5334_v36  ;;  %1714 = vmatprep.subr.bf16.mxu1 %v5336_v37  ;;  %v5432_v36 = vld [vmem:[#allocation5 + $0x30c] ss:$16 sps:$4 sm:$0xff]   ;;  %v5427_v37 = vld [vmem:[#allocation5 + $0x300] ss:$16 sps:$4 sm:$0xff]  }
  0x81   :  { %1543 = vmatpush1.bf16.msra.mxu0 %v5338_v38  ;;  %1715 = vmatpush1.bf16.msra.mxu1 %v5339_v39  ;;  %v5430_v38 = vld [vmem:[#allocation5 + $0x308] ss:$16 sps:$4 sm:$0xff]   ;;  %v5435_v39 = vld [vmem:[#allocation5 + $0x324] ss:$16 sps:$4 sm:$0xff]  }
  0x82   :  { %1544 = vmatprep.subr.bf16.mxu0 %v5340_v40  ;;  %1716 = vmatprep.subr.bf16.mxu1 %v5342_v41  ;;  %v5438_v40 = vld [vmem:[#allocation5 + $0x32c] ss:$16 sps:$4 sm:$0xff]   ;;  %v5433_v41 = vld [vmem:[#allocation5 + $0x320] ss:$16 sps:$4 sm:$0xff]  }
  0x85   :  { %1545 = vmatpush1.bf16.msra.mxu0 %v5344_v42  ;;  %1717 = vmatpush1.bf16.msra.mxu1 %v5345_v43  ;;  %v5436_v42 = vld [vmem:[#allocation5 + $0x328] ss:$16 sps:$4 sm:$0xff]   ;;  %v5441_v43 = vld [vmem:[#allocation5 + $0x344] ss:$16 sps:$4 sm:$0xff]  }
  0x86   :  { %1546 = vmatprep.subr.bf16.mxu0 %v5346_v44  ;;  %1718 = vmatprep.subr.bf16.mxu1 %v5348_v45  ;;  %v5444_v44 = vld [vmem:[#allocation5 + $0x34c] ss:$16 sps:$4 sm:$0xff]   ;;  %v5439_v45 = vld [vmem:[#allocation5 + $0x340] ss:$16 sps:$4 sm:$0xff]  }
  0x89   :  { %1547 = vmatpush1.bf16.msra.mxu0 %v5350_v46  ;;  %1719 = vmatpush1.bf16.msra.mxu1 %v5351_v47  ;;  %v5442_v46 = vld [vmem:[#allocation5 + $0x348] ss:$16 sps:$4 sm:$0xff]   ;;  %v5447_v47 = vld [vmem:[#allocation5 + $0x364] ss:$16 sps:$4 sm:$0xff]  }
  0x8a   :  { %1548 = vmatprep.subr.bf16.mxu0 %v5352_v49  ;;  %1720 = vmatprep.subr.bf16.mxu1 %v5354_v50  ;;  %v5445_v49 = vld [vmem:[#allocation5 + $0x360] ss:$16 sps:$4 sm:$0xff]   ;;  %v5448_v50 = vld [vmem:[#allocation5 + $0x368] ss:$16 sps:$4 sm:$0xff]  }
  0x8d   :  { %1549 = vmatpush1.bf16.msra.mxu0 %v5356_v51  ;;  %1721 = vmatpush1.bf16.msra.mxu1 %v5357_v52  ;;  %v5453_v51 = vld [vmem:[#allocation5 + $0x384] ss:$16 sps:$4 sm:$0xff]   ;;  %v5456_v52 = vld [vmem:[#allocation5 + $0x38c] ss:$16 sps:$4 sm:$0xff]  }
  0x8e   :  { %1550 = vmatprep.subr.bf16.mxu0 %v5358_v53  ;;  %1722 = vmatprep.subr.bf16.mxu1 %v5360_v54  ;;  %v5451_v53 = vld [vmem:[#allocation5 + $0x380] ss:$16 sps:$4 sm:$0xff]   ;;  %v5454_v54 = vld [vmem:[#allocation5 + $0x388] ss:$16 sps:$4 sm:$0xff]  }
  0x91   :  { %1551 = vmatpush1.bf16.msra.mxu0 %v5362_v55  ;;  %1723 = vmatpush1.bf16.msra.mxu1 %v5363_v56  ;;  %v5459_v55 = vld [vmem:[#allocation5 + $0x3a4] ss:$16 sps:$4 sm:$0xff]   ;;  %v5462_v56 = vld [vmem:[#allocation5 + $0x3ac] ss:$16 sps:$4 sm:$0xff]  }
  0x92   :  { %1552 = vmatprep.subr.bf16.mxu0 %v5364_v57  ;;  %1724 = vmatprep.subr.bf16.mxu1 %v5366_v58  ;;  %v5457_v57 = vld [vmem:[#allocation5 + $0x3a0] ss:$16 sps:$4 sm:$0xff]   ;;  %v5460_v58 = vld [vmem:[#allocation5 + $0x3a8] ss:$16 sps:$4 sm:$0xff]  }
  0x95   :  { %1553 = vmatpush1.bf16.msra.mxu0 %v5368_v59  ;;  %1725 = vmatpush1.bf16.msra.mxu1 %v5369_v60  ;;  %v5465_v59 = vld [vmem:[#allocation5 + $0x3c4] ss:$16 sps:$4 sm:$0xff]   ;;  %v5468_v60 = vld [vmem:[#allocation5 + $0x3cc] ss:$16 sps:$4 sm:$0xff]  }
  0x96   :  { %1554 = vmatprep.subr.bf16.mxu0 %v5370_v61  ;;  %1726 = vmatprep.subr.bf16.mxu1 %v5372_v62  ;;  %v5463_v61 = vld [vmem:[#allocation5 + $0x3c0] ss:$16 sps:$4 sm:$0xff]   ;;  %v5466_v62 = vld [vmem:[#allocation5 + $0x3c8] ss:$16 sps:$4 sm:$0xff]  }
  0x99   :  { %1555 = vmatpush1.bf16.msra.mxu0 %v5374_v63  ;;  %1727 = vmatpush1.bf16.msra.mxu1 %v5375_v0  ;;  %v5471_v63 = vld [vmem:[#allocation5 + $0x3e4] ss:$16 sps:$4 sm:$0xff]   ;;  %v5474_v0 = vld [vmem:[#allocation5 + $0x3ec] ss:$16 sps:$4 sm:$0xff]  }
  0x9a   :  { %1567 = vmatprep.subr.bf16.mxu0 %v5381_v1  ;;  %1739 = vmatprep.subr.bf16.mxu1 %v5384_v2  ;;  %v5469_v1 = vld [vmem:[#allocation5 + $0x3e0] ss:$16 sps:$4 sm:$0xff]   ;;  %v5472_v2 = vld [vmem:[#allocation5 + $0x3e8] ss:$16 sps:$4 sm:$0xff]  }
  0x9c   :  { %1557 = vmatmul.mubr.bf16.vlgmr.msra.gmra.mrb[0].mxu0 %v5376_v3  ;;  %1729 = vmatmul.mubr.bf16.vlgmr.msra.gmra.mrb[0].mxu1 %v5376_v3  ;;  %v5480_v3 = vld [vmem:[#allocation5 + $0x404] ss:$16 sps:$4 sm:$0xff]  }
  0x9d   :  { %1568 = vmatpush1.bf16.msra.mxu0 %v5379_v4  ;;  %1740 = vmatpush1.bf16.msra.mxu1 %v5382_v5  ;;  %v5483_v4 = vld [vmem:[#allocation5 + $0x40c] ss:$16 sps:$4 sm:$0xff]  }
  0x9e   :  { %1569 = vmatprep.subr.bf16.mxu0 %v5387_v6  ;;  %1741 = vmatprep.subr.bf16.mxu1 %v5390_v7  ;;  %v5475_v5 = vld [vmem:[#allocation2 + $0x8] ss:$28 sps:$4 sm:$0xff]   ;;  %v5481_v7 = vld [vmem:[#allocation5 + $0x408] ss:$16 sps:$4 sm:$0xff]  }
  0x9f   :  { %1599 = vmatprep.mubr.bf16.mxu0 %v5477_v30  ;;  %1771 = vmatprep.mubr.bf16.mxu1 %v5477_v30  ;;  %v5478_v6 = vld [vmem:[#allocation5 + $0x400] ss:$16 sps:$4 sm:$0xff]   ;;  %v5519_v30 = vld [vmem:[#allocation5 + $0x4cc] ss:$16 sps:$4 sm:$0xff]  }
  0xa1   :  { %1570 = vmatpush1.bf16.msra.mxu0 %v5385_v8  ;;  %1742 = vmatpush1.bf16.msra.mxu1 %v5388_v9  ;;  %v5486_v8 = vld [vmem:[#allocation5 + $0x424] ss:$16 sps:$4 sm:$0xff]   ;;  %v5489_v9 = vld [vmem:[#allocation5 + $0x42c] ss:$16 sps:$4 sm:$0xff]  }
  0xa2   :  { %1571 = vmatprep.subr.bf16.mxu0 %v5393_v10  ;;  %1743 = vmatprep.subr.bf16.mxu1 %v5396_v11  ;;  %v5484_v10 = vld [vmem:[#allocation5 + $0x420] ss:$16 sps:$4 sm:$0xff]   ;;  %v5487_v11 = vld [vmem:[#allocation5 + $0x428] ss:$16 sps:$4 sm:$0xff]  }
  0xa5   :  { %1572 = vmatpush1.bf16.msra.mxu0 %v5391_v12  ;;  %1744 = vmatpush1.bf16.msra.mxu1 %v5394_v13  ;;  %v5576_v12 = vld [vmem:[#allocation2 + $0x14] ss:$28 sps:$4 sm:$0xff]   ;;  %v5492_v13 = vld [vmem:[#allocation5 + $0x444] ss:$16 sps:$4 sm:$0xff]  }
  0xa6   :  { %1573 = vmatprep.subr.bf16.mxu0 %v5399_v14  ;;  %1745 = vmatprep.subr.bf16.mxu1 %v5402_v15  ;;  %v5495_v14 = vld [vmem:[#allocation5 + $0x44c] ss:$16 sps:$4 sm:$0xff]   ;;  %v5490_v15 = vld [vmem:[#allocation5 + $0x440] ss:$16 sps:$4 sm:$0xff]  }
  0xa9   :  { %1574 = vmatpush1.bf16.msra.mxu0 %v5397_v16  ;;  %1746 = vmatpush1.bf16.msra.mxu1 %v5400_v17  ;;  %v5493_v16 = vld [vmem:[#allocation5 + $0x448] ss:$16 sps:$4 sm:$0xff]   ;;  %v5498_v17 = vld [vmem:[#allocation5 + $0x464] ss:$16 sps:$4 sm:$0xff]  }
  0xaa   :  { %1575 = vmatprep.subr.bf16.mxu0 %v5405_v18  ;;  %1747 = vmatprep.subr.bf16.mxu1 %v5408_v19  ;;  %v5501_v18 = vld [vmem:[#allocation5 + $0x46c] ss:$16 sps:$4 sm:$0xff]   ;;  %v5496_v19 = vld [vmem:[#allocation5 + $0x460] ss:$16 sps:$4 sm:$0xff]  }
  0xad   :  { %1576 = vmatpush1.bf16.msra.mxu0 %v5403_v20  ;;  %1748 = vmatpush1.bf16.msra.mxu1 %v5406_v21  ;;  %v5499_v20 = vld [vmem:[#allocation5 + $0x468] ss:$16 sps:$4 sm:$0xff]   ;;  %v5504_v21 = vld [vmem:[#allocation5 + $0x484] ss:$16 sps:$4 sm:$0xff]  }
  0xae   :  { %1577 = vmatprep.subr.bf16.mxu0 %v5411_v22  ;;  %1749 = vmatprep.subr.bf16.mxu1 %v5414_v23  ;;  %v5507_v22 = vld [vmem:[#allocation5 + $0x48c] ss:$16 sps:$4 sm:$0xff]   ;;  %v5502_v23 = vld [vmem:[#allocation5 + $0x480] ss:$16 sps:$4 sm:$0xff]  }
  0xb1   :  { %1578 = vmatpush1.bf16.msra.mxu0 %v5409_v24  ;;  %1750 = vmatpush1.bf16.msra.mxu1 %v5412_v25  ;;  %v5505_v24 = vld [vmem:[#allocation5 + $0x488] ss:$16 sps:$4 sm:$0xff]   ;;  %v5510_v25 = vld [vmem:[#allocation5 + $0x4a4] ss:$16 sps:$4 sm:$0xff]  }
  0xb2   :  { %1579 = vmatprep.subr.bf16.mxu0 %v5417_v26  ;;  %1751 = vmatprep.subr.bf16.mxu1 %v5420_v27  ;;  %v5513_v26 = vld [vmem:[#allocation5 + $0x4ac] ss:$16 sps:$4 sm:$0xff]   ;;  %v5508_v27 = vld [vmem:[#allocation5 + $0x4a0] ss:$16 sps:$4 sm:$0xff]  }
  0xb5   :  { %1580 = vmatpush1.bf16.msra.mxu0 %v5415_v28  ;;  %1752 = vmatpush1.bf16.msra.mxu1 %v5418_v29  ;;  %v5511_v28 = vld [vmem:[#allocation5 + $0x4a8] ss:$16 sps:$4 sm:$0xff]   ;;  %v5516_v29 = vld [vmem:[#allocation5 + $0x4c4] ss:$16 sps:$4 sm:$0xff]  }
  0xb6   :  { %1581 = vmatprep.subr.bf16.mxu0 %v5423_v31  ;;  %1753 = vmatprep.subr.bf16.mxu1 %v5426_v32  ;;  %v5514_v31 = vld [vmem:[#allocation5 + $0x4c0] ss:$16 sps:$4 sm:$0xff]   ;;  %v5517_v32 = vld [vmem:[#allocation5 + $0x4c8] ss:$16 sps:$4 sm:$0xff]  }
  0xb9   :  { %1582 = vmatpush1.bf16.msra.mxu0 %v5421_v33  ;;  %1754 = vmatpush1.bf16.msra.mxu1 %v5424_v34  ;;  %v5522_v33 = vld [vmem:[#allocation5 + $0x4e4] ss:$16 sps:$4 sm:$0xff]   ;;  %v5525_v34 = vld [vmem:[#allocation5 + $0x4ec] ss:$16 sps:$4 sm:$0xff]  }
  0xba   :  { %1583 = vmatprep.subr.bf16.mxu0 %v5429_v35  ;;  %1755 = vmatprep.subr.bf16.mxu1 %v5432_v36  ;;  %v5520_v35 = vld [vmem:[#allocation5 + $0x4e0] ss:$16 sps:$4 sm:$0xff]   ;;  %v5523_v36 = vld [vmem:[#allocation5 + $0x4e8] ss:$16 sps:$4 sm:$0xff]  }
  0xbd   :  { %1584 = vmatpush1.bf16.msra.mxu0 %v5427_v37  ;;  %1756 = vmatpush1.bf16.msra.mxu1 %v5430_v38  ;;  %v5528_v37 = vld [vmem:[#allocation5 + $0x504] ss:$16 sps:$4 sm:$0xff]   ;;  %v5531_v38 = vld [vmem:[#allocation5 + $0x50c] ss:$16 sps:$4 sm:$0xff]  }
  0xbe   :  { %1585 = vmatprep.subr.bf16.mxu0 %v5435_v39  ;;  %1757 = vmatprep.subr.bf16.mxu1 %v5438_v40  ;;  %v5526_v39 = vld [vmem:[#allocation5 + $0x500] ss:$16 sps:$4 sm:$0xff]   ;;  %v5529_v40 = vld [vmem:[#allocation5 + $0x508] ss:$16 sps:$4 sm:$0xff]  }
  0xc1   :  { %1586 = vmatpush1.bf16.msra.mxu0 %v5433_v41  ;;  %1758 = vmatpush1.bf16.msra.mxu1 %v5436_v42  ;;  %v5534_v41 = vld [vmem:[#allocation5 + $0x524] ss:$16 sps:$4 sm:$0xff]   ;;  %v5537_v42 = vld [vmem:[#allocation5 + $0x52c] ss:$16 sps:$4 sm:$0xff]  }
  0xc2   :  { %1587 = vmatprep.subr.bf16.mxu0 %v5441_v43  ;;  %1759 = vmatprep.subr.bf16.mxu1 %v5444_v44  ;;  %v5532_v43 = vld [vmem:[#allocation5 + $0x520] ss:$16 sps:$4 sm:$0xff]   ;;  %v5535_v44 = vld [vmem:[#allocation5 + $0x528] ss:$16 sps:$4 sm:$0xff]  }
  0xc5   :  { %1588 = vmatpush1.bf16.msra.mxu0 %v5439_v45  ;;  %1760 = vmatpush1.bf16.msra.mxu1 %v5442_v46  ;;  %v5540_v45 = vld [vmem:[#allocation5 + $0x544] ss:$16 sps:$4 sm:$0xff]   ;;  %v5543_v46 = vld [vmem:[#allocation5 + $0x54c] ss:$16 sps:$4 sm:$0xff]  }
  0xc6   :  { %1589 = vmatprep.subr.bf16.mxu0 %v5447_v47  ;;  %1761 = vmatprep.subr.bf16.mxu1 %v5450_v48  ;;  %v5538_v47 = vld [vmem:[#allocation5 + $0x540] ss:$16 sps:$4 sm:$0xff]   ;;  %v5541_v48 = vld [vmem:[#allocation5 + $0x548] ss:$16 sps:$4 sm:$0xff]  }
  0xc9   :  { %1590 = vmatpush1.bf16.msra.mxu0 %v5445_v49  ;;  %1762 = vmatpush1.bf16.msra.mxu1 %v5448_v50  ;;  %v5546_v49 = vld [vmem:[#allocation5 + $0x564] ss:$16 sps:$4 sm:$0xff]   ;;  %v5549_v50 = vld [vmem:[#allocation5 + $0x56c] ss:$16 sps:$4 sm:$0xff]  }
  0xca   :  { %1591 = vmatprep.subr.bf16.mxu0 %v5453_v51  ;;  %1763 = vmatprep.subr.bf16.mxu1 %v5456_v52  ;;  %v5544_v51 = vld [vmem:[#allocation5 + $0x560] ss:$16 sps:$4 sm:$0xff]   ;;  %v5547_v52 = vld [vmem:[#allocation5 + $0x568] ss:$16 sps:$4 sm:$0xff]  }
  0xcd   :  { %1592 = vmatpush1.bf16.msra.mxu0 %v5451_v53  ;;  %1764 = vmatpush1.bf16.msra.mxu1 %v5454_v54  ;;  %v5552_v53 = vld [vmem:[#allocation5 + $0x584] ss:$16 sps:$4 sm:$0xff]   ;;  %v5555_v54 = vld [vmem:[#allocation5 + $0x58c] ss:$16 sps:$4 sm:$0xff]  }
  0xce   :  { %1593 = vmatprep.subr.bf16.mxu0 %v5459_v55  ;;  %1765 = vmatprep.subr.bf16.mxu1 %v5462_v56  ;;  %v5550_v55 = vld [vmem:[#allocation5 + $0x580] ss:$16 sps:$4 sm:$0xff]   ;;  %v5553_v56 = vld [vmem:[#allocation5 + $0x588] ss:$16 sps:$4 sm:$0xff]  }
  0xd1   :  { %1594 = vmatpush1.bf16.msra.mxu0 %v5457_v57  ;;  %1766 = vmatpush1.bf16.msra.mxu1 %v5460_v58  ;;  %v5558_v57 = vld [vmem:[#allocation5 + $0x5a4] ss:$16 sps:$4 sm:$0xff]   ;;  %v5561_v58 = vld [vmem:[#allocation5 + $0x5ac] ss:$16 sps:$4 sm:$0xff]  }
  0xd2   :  { %1595 = vmatprep.subr.bf16.mxu0 %v5465_v59  ;;  %1767 = vmatprep.subr.bf16.mxu1 %v5468_v60  ;;  %v5556_v59 = vld [vmem:[#allocation5 + $0x5a0] ss:$16 sps:$4 sm:$0xff]   ;;  %v5559_v60 = vld [vmem:[#allocation5 + $0x5a8] ss:$16 sps:$4 sm:$0xff]  }
  0xd5   :  { %1596 = vmatpush1.bf16.msra.mxu0 %v5463_v61  ;;  %1768 = vmatpush1.bf16.msra.mxu1 %v5466_v62  ;;  %v5564_v61 = vld [vmem:[#allocation5 + $0x5c4] ss:$16 sps:$4 sm:$0xff]   ;;  %v5567_v62 = vld [vmem:[#allocation5 + $0x5cc] ss:$16 sps:$4 sm:$0xff]  }
  0xd6   :  { %1597 = vmatprep.subr.bf16.mxu0 %v5471_v63  ;;  %1769 = vmatprep.subr.bf16.mxu1 %v5474_v0  ;;  %v5562_v63 = vld [vmem:[#allocation5 + $0x5c0] ss:$16 sps:$4 sm:$0xff]   ;;  %v5565_v0 = vld [vmem:[#allocation5 + $0x5c8] ss:$16 sps:$4 sm:$0xff]  }
  0xd9   :  { %1598 = vmatpush1.bf16.msra.mxu0 %v5469_v1  ;;  %1770 = vmatpush1.bf16.msra.mxu1 %v5472_v2  ;;  %v5570_v1 = vld [vmem:[#allocation5 + $0x5e4] ss:$16 sps:$4 sm:$0xff]   ;;  %v5573_v2 = vld [vmem:[#allocation5 + $0x5ec] ss:$16 sps:$4 sm:$0xff]  }
  0xda   :  { %1610 = vmatprep.subr.bf16.mxu0 %v5480_v3  ;;  %1782 = vmatprep.subr.bf16.mxu1 %v5483_v4  ;;  %v5568_v3 = vld [vmem:[#allocation5 + $0x5e0] ss:$16 sps:$4 sm:$0xff]   ;;  %v5571_v4 = vld [vmem:[#allocation5 + $0x5e8] ss:$16 sps:$4 sm:$0xff]  }
  0xdc   :  { %1600 = vmatmul.mubr.bf16.vlgmr.msra.gmra.mrb[0].mxu0 %v5475_v5  ;;  %1772 = vmatmul.mubr.bf16.vlgmr.msra.gmra.mrb[0].mxu1 %v5475_v5  ;;  %v5579_v5 = vld [vmem:[#allocation5 + $0x604] ss:$16 sps:$4 sm:$0xff]  }
  0xdd   :  { %1611 = vmatpush1.bf16.msra.mxu0 %v5478_v6  ;;  %1783 = vmatpush1.bf16.msra.mxu1 %v5481_v7  ;;  %v5574_v6 = vld [vmem:[#allocation2 + $0x10] ss:$28 sps:$4 sm:$0xff]   ;;  %v5582_v7 = vld [vmem:[#allocation5 + $0x60c] ss:$16 sps:$4 sm:$0xff]  }
  0xde   :  { %1612 = vmatprep.subr.bf16.mxu0 %v5486_v8  ;;  %1784 = vmatprep.subr.bf16.mxu1 %v5489_v9  ;;  %v5577_v8 = vld [vmem:[#allocation5 + $0x600] ss:$16 sps:$4 sm:$0xff]   ;;  %v5580_v9 = vld [vmem:[#allocation5 + $0x608] ss:$16 sps:$4 sm:$0xff]  }
  0xdf   :  { %1642 = vmatprep.mubr.bf16.mxu0 %v5576_v12  ;;  %1814 = vmatprep.mubr.bf16.mxu1 %v5576_v12  ;;  %v5583_v12 = vld [vmem:[#allocation5 + $0x620] ss:$16 sps:$4 sm:$0xff]  }
  0xe1   :  { %1613 = vmatpush1.bf16.msra.mxu0 %v5484_v10  ;;  %1785 = vmatpush1.bf16.msra.mxu1 %v5487_v11  ;;  %v5585_v10 = vld [vmem:[#allocation5 + $0x624] ss:$16 sps:$4 sm:$0xff]   ;;  %v5588_v11 = vld [vmem:[#allocation5 + $0x62c] ss:$16 sps:$4 sm:$0xff]  }
  0xe2   :  { %1614 = vmatprep.subr.bf16.mxu0 %v5492_v13  ;;  %1786 = vmatprep.subr.bf16.mxu1 %v5495_v14  ;;  %v5586_v13 = vld [vmem:[#allocation5 + $0x628] ss:$16 sps:$4 sm:$0xff]   ;;  %v5591_v14 = vld [vmem:[#allocation5 + $0x644] ss:$16 sps:$4 sm:$0xff]  }
  0xe5   :  { %1615 = vmatpush1.bf16.msra.mxu0 %v5490_v15  ;;  %1787 = vmatpush1.bf16.msra.mxu1 %v5493_v16  ;;  %v5594_v15 = vld [vmem:[#allocation5 + $0x64c] ss:$16 sps:$4 sm:$0xff]   ;;  %v5589_v16 = vld [vmem:[#allocation5 + $0x640] ss:$16 sps:$4 sm:$0xff]  }
  0xe6   :  { %1616 = vmatprep.subr.bf16.mxu0 %v5498_v17  ;;  %1788 = vmatprep.subr.bf16.mxu1 %v5501_v18  ;;  %v5592_v17 = vld [vmem:[#allocation5 + $0x648] ss:$16 sps:$4 sm:$0xff]   ;;  %v6217_v18 = vmov 0  }
  0xe9   :  { %1617 = vmatpush1.bf16.msra.mxu0 %v5496_v19  ;;  %1789 = vmatpush1.bf16.msra.mxu1 %v5499_v20  ;;  %v5597_v19 = vld [vmem:[#allocation5 + $0x664] ss:$16 sps:$4 sm:$0xff]   ;;  %v5600_v20 = vld [vmem:[#allocation5 + $0x66c] ss:$16 sps:$4 sm:$0xff]  }
  0xea   :  { %1618 = vmatprep.subr.bf16.mxu0 %v5504_v21  ;;  %1790 = vmatprep.subr.bf16.mxu1 %v5507_v22  ;;  %v5595_v21 = vld [vmem:[#allocation5 + $0x660] ss:$16 sps:$4 sm:$0xff]   ;;  %v5598_v22 = vld [vmem:[#allocation5 + $0x668] ss:$16 sps:$4 sm:$0xff]  }
  0xed   :  { %1619 = vmatpush1.bf16.msra.mxu0 %v5502_v23  ;;  %1791 = vmatpush1.bf16.msra.mxu1 %v5505_v24  ;;  %v5603_v23 = vld [vmem:[#allocation5 + $0x684] ss:$16 sps:$4 sm:$0xff]   ;;  %v5606_v24 = vld [vmem:[#allocation5 + $0x68c] ss:$16 sps:$4 sm:$0xff]  }
  0xee   :  { %1620 = vmatprep.subr.bf16.mxu0 %v5510_v25  ;;  %1792 = vmatprep.subr.bf16.mxu1 %v5513_v26  ;;  %v5601_v25 = vld [vmem:[#allocation5 + $0x680] ss:$16 sps:$4 sm:$0xff]   ;;  %v5604_v26 = vld [vmem:[#allocation5 + $0x688] ss:$16 sps:$4 sm:$0xff]  }
  0xf1   :  { %1621 = vmatpush1.bf16.msra.mxu0 %v5508_v27  ;;  %1793 = vmatpush1.bf16.msra.mxu1 %v5511_v28  ;;  %v5609_v27 = vld [vmem:[#allocation5 + $0x6a4] ss:$16 sps:$4 sm:$0xff]   ;;  %v5612_v28 = vld [vmem:[#allocation5 + $0x6ac] ss:$16 sps:$4 sm:$0xff]  }
  0xf2   :  { %1622 = vmatprep.subr.bf16.mxu0 %v5516_v29  ;;  %1794 = vmatprep.subr.bf16.mxu1 %v5519_v30  ;;  %v5607_v29 = vld [vmem:[#allocation5 + $0x6a0] ss:$16 sps:$4 sm:$0xff]   ;;  %v5610_v30 = vld [vmem:[#allocation5 + $0x6a8] ss:$16 sps:$4 sm:$0xff]  }
  0xf5   :  { %1623 = vmatpush1.bf16.msra.mxu0 %v5514_v31  ;;  %1795 = vmatpush1.bf16.msra.mxu1 %v5517_v32  ;;  %v5615_v31 = vld [vmem:[#allocation5 + $0x6c4] ss:$16 sps:$4 sm:$0xff]   ;;  %v5618_v32 = vld [vmem:[#allocation5 + $0x6cc] ss:$16 sps:$4 sm:$0xff]  }
  0xf6   :  { %1624 = vmatprep.subr.bf16.mxu0 %v5522_v33  ;;  %1796 = vmatprep.subr.bf16.mxu1 %v5525_v34  ;;  %v5613_v33 = vld [vmem:[#allocation5 + $0x6c0] ss:$16 sps:$4 sm:$0xff]   ;;  %v5616_v34 = vld [vmem:[#allocation5 + $0x6c8] ss:$16 sps:$4 sm:$0xff]  }
  0xf9   :  { %1625 = vmatpush1.bf16.msra.mxu0 %v5520_v35  ;;  %1797 = vmatpush1.bf16.msra.mxu1 %v5523_v36  ;;  %v5621_v35 = vld [vmem:[#allocation5 + $0x6e4] ss:$16 sps:$4 sm:$0xff]   ;;  %v5624_v36 = vld [vmem:[#allocation5 + $0x6ec] ss:$16 sps:$4 sm:$0xff]  }
  0xfa   :  { %1626 = vmatprep.subr.bf16.mxu0 %v5528_v37  ;;  %1798 = vmatprep.subr.bf16.mxu1 %v5531_v38  ;;  %v5619_v37 = vld [vmem:[#allocation5 + $0x6e0] ss:$16 sps:$4 sm:$0xff]   ;;  %v5622_v38 = vld [vmem:[#allocation5 + $0x6e8] ss:$16 sps:$4 sm:$0xff]  }
  0xfd   :  { %1627 = vmatpush1.bf16.msra.mxu0 %v5526_v39  ;;  %1799 = vmatpush1.bf16.msra.mxu1 %v5529_v40  ;;  %v5628_v39 = vld [vmem:[#allocation7 + $0x4] ss:$16 sps:$4 sm:$0xff]   ;;  %v5631_v40 = vld [vmem:[#allocation7 + $0xc] ss:$16 sps:$4 sm:$0xff]  }
  0xfe   :  { %1628 = vmatprep.subr.bf16.mxu0 %v5534_v41  ;;  %1800 = vmatprep.subr.bf16.mxu1 %v5537_v42  ;;  %v5625_v41 = vld [vmem:[#allocation2 + $0x18] ss:$28 sps:$4 sm:$0xff]  }
  0xff   :  { %v5626_v42 = vld [vmem:[#allocation7] ss:$16 sps:$4 sm:$0xff]  }
 0x101   :  { %1629 = vmatpush1.bf16.msra.mxu0 %v5532_v43  ;;  %1801 = vmatpush1.bf16.msra.mxu1 %v5535_v44  ;;  %v5629_v43 = vld [vmem:[#allocation7 + $0x8] ss:$16 sps:$4 sm:$0xff]   ;;  %v5634_v44 = vld [vmem:[#allocation7 + $0x24] ss:$16 sps:$4 sm:$0xff]  }
 0x102   :  { %1630 = vmatprep.subr.bf16.mxu0 %v5540_v45  ;;  %1802 = vmatprep.subr.bf16.mxu1 %v5543_v46  ;;  %v5637_v45 = vld [vmem:[#allocation7 + $0x2c] ss:$16 sps:$4 sm:$0xff]   ;;  %v5632_v46 = vld [vmem:[#allocation7 + $0x20] ss:$16 sps:$4 sm:$0xff]  }
 0x105   :  { %1631 = vmatpush1.bf16.msra.mxu0 %v5538_v47  ;;  %1803 = vmatpush1.bf16.msra.mxu1 %v5541_v48  ;;  %v5635_v47 = vld [vmem:[#allocation7 + $0x28] ss:$16 sps:$4 sm:$0xff]   ;;  %v5640_v48 = vld [vmem:[#allocation7 + $0x44] ss:$16 sps:$4 sm:$0xff]  }
 0x106   :  { %1632 = vmatprep.subr.bf16.mxu0 %v5546_v49  ;;  %1804 = vmatprep.subr.bf16.mxu1 %v5549_v50  ;;  %v5643_v49 = vld [vmem:[#allocation7 + $0x4c] ss:$16 sps:$4 sm:$0xff]   ;;  %v5638_v50 = vld [vmem:[#allocation7 + $0x40] ss:$16 sps:$4 sm:$0xff]  }
 0x109   :  { %1633 = vmatpush1.bf16.msra.mxu0 %v5544_v51  ;;  %1805 = vmatpush1.bf16.msra.mxu1 %v5547_v52  ;;  %v5641_v51 = vld [vmem:[#allocation7 + $0x48] ss:$16 sps:$4 sm:$0xff]   ;;  %v5646_v52 = vld [vmem:[#allocation7 + $0x64] ss:$16 sps:$4 sm:$0xff]  }
 0x10a   :  { %1634 = vmatprep.subr.bf16.mxu0 %v5552_v53  ;;  %1806 = vmatprep.subr.bf16.mxu1 %v5555_v54  ;;  %v5649_v53 = vld [vmem:[#allocation7 + $0x6c] ss:$16 sps:$4 sm:$0xff]   ;;  %v5644_v54 = vld [vmem:[#allocation7 + $0x60] ss:$16 sps:$4 sm:$0xff]  }
 0x10d   :  { %1635 = vmatpush1.bf16.msra.mxu0 %v5550_v55  ;;  %1807 = vmatpush1.bf16.msra.mxu1 %v5553_v56  ;;  %v5647_v55 = vld [vmem:[#allocation7 + $0x68] ss:$16 sps:$4 sm:$0xff]   ;;  %v5652_v56 = vld [vmem:[#allocation7 + $0x84] ss:$16 sps:$4 sm:$0xff]  }
 0x10e   :  { %1636 = vmatprep.subr.bf16.mxu0 %v5558_v57  ;;  %1808 = vmatprep.subr.bf16.mxu1 %v5561_v58  ;;  %v5655_v57 = vld [vmem:[#allocation7 + $0x8c] ss:$16 sps:$4 sm:$0xff]   ;;  %v5650_v58 = vld [vmem:[#allocation7 + $0x80] ss:$16 sps:$4 sm:$0xff]  }
 0x111   :  { %1637 = vmatpush1.bf16.msra.mxu0 %v5556_v59  ;;  %1809 = vmatpush1.bf16.msra.mxu1 %v5559_v60  ;;  %v5653_v59 = vld [vmem:[#allocation7 + $0x88] ss:$16 sps:$4 sm:$0xff]   ;;  %v5658_v60 = vld [vmem:[#allocation7 + $0xa4] ss:$16 sps:$4 sm:$0xff]  }
 0x112   :  { %1638 = vmatprep.subr.bf16.mxu0 %v5564_v61  ;;  %1810 = vmatprep.subr.bf16.mxu1 %v5567_v62  ;;  %v5661_v61 = vld [vmem:[#allocation7 + $0xac] ss:$16 sps:$4 sm:$0xff]   ;;  %v5656_v62 = vld [vmem:[#allocation7 + $0xa0] ss:$16 sps:$4 sm:$0xff]  }
 0x115   :  { %1639 = vmatpush1.bf16.msra.mxu0 %v5562_v63  ;;  %1811 = vmatpush1.bf16.msra.mxu1 %v5565_v0  ;;  %v5659_v63 = vld [vmem:[#allocation7 + $0xa8] ss:$16 sps:$4 sm:$0xff]   ;;  %v5664_v0 = vld [vmem:[#allocation7 + $0xc4] ss:$16 sps:$4 sm:$0xff]  }
 0x116   :  { %1640 = vmatprep.subr.bf16.mxu0 %v5570_v1  ;;  %1812 = vmatprep.subr.bf16.mxu1 %v5573_v2  ;;  %v5667_v1 = vld [vmem:[#allocation7 + $0xcc] ss:$16 sps:$4 sm:$0xff]   ;;  %v5662_v2 = vld [vmem:[#allocation7 + $0xc0] ss:$16 sps:$4 sm:$0xff]  }
 0x119   :  { %1641 = vmatpush1.bf16.msra.mxu0 %v5568_v3  ;;  %1813 = vmatpush1.bf16.msra.mxu1 %v5571_v4  ;;  %v5665_v3 = vld [vmem:[#allocation7 + $0xc8] ss:$16 sps:$4 sm:$0xff]   ;;  %v5670_v4 = vld [vmem:[#allocation7 + $0xe4] ss:$16 sps:$4 sm:$0xff]  }
 0x11a   :  { %1653 = vmatprep.subr.bf16.mxu0 %v5579_v5  ;;  %1825 = vmatprep.subr.bf16.mxu1 %v5582_v7  ;;  %v5673_v5 = vld [vmem:[#allocation7 + $0xec] ss:$16 sps:$4 sm:$0xff]   ;;  %v5671_v7 = vld [vmem:[#allocation7 + $0xe8] ss:$16 sps:$4 sm:$0xff]  }
 0x11c   :  { %1643 = vmatmul.mubr.bf16.vlgmr.msra.gmra.mrb[0].mxu0 %v5574_v6  ;;  %1815 = vmatmul.mubr.bf16.vlgmr.msra.gmra.mrb[0].mxu1 %v5574_v6  ;;  %v5668_v6 = vld [vmem:[#allocation7 + $0xe0] ss:$16 sps:$4 sm:$0xff]  }
 0x11d   :  { %1654 = vmatpush1.bf16.msra.mxu0 %v5577_v8  ;;  %1826 = vmatpush1.bf16.msra.mxu1 %v5580_v9  ;;  %v5676_v8 = vld [vmem:[#allocation7 + $0x104] ss:$16 sps:$4 sm:$0xff]   ;;  %v5679_v9 = vld [vmem:[#allocation7 + $0x10c] ss:$16 sps:$4 sm:$0xff]  }
 0x11e   :  { %1655 = vmatprep.subr.bf16.mxu0 %v5585_v10  ;;  %1827 = vmatprep.subr.bf16.mxu1 %v5588_v11  ;;  %v5674_v10 = vld [vmem:[#allocation7 + $0x100] ss:$16 sps:$4 sm:$0xff]   ;;  %v5677_v11 = vld [vmem:[#allocation7 + $0x108] ss:$16 sps:$4 sm:$0xff]  }
 0x11f   :  { %1685 = vmatprep.mubr.bf16.mxu0 %v6217_v18  ;;  %1857 = vmatprep.mubr.bf16.mxu1 %v6217_v18  ;;  %v5686_v18 = vld [vmem:[#allocation7 + $0x140] ss:$16 sps:$4 sm:$0xff]  }
 0x121   :  { %1656 = vmatpush1.bf16.msra.mxu0 %v5583_v12  ;;  %1828 = vmatpush1.bf16.msra.mxu1 %v5586_v13  ;;  %v5682_v12 = vld [vmem:[#allocation7 + $0x124] ss:$16 sps:$4 sm:$0xff]   ;;  %v5685_v13 = vld [vmem:[#allocation7 + $0x12c] ss:$16 sps:$4 sm:$0xff]  }
 0x122   :  { %1657 = vmatprep.subr.bf16.mxu0 %v5591_v14  ;;  %1829 = vmatprep.subr.bf16.mxu1 %v5594_v15  ;;  %v5680_v14 = vld [vmem:[#allocation7 + $0x120] ss:$16 sps:$4 sm:$0xff]   ;;  %v5683_v15 = vld [vmem:[#allocation7 + $0x128] ss:$16 sps:$4 sm:$0xff]  }
 0x125   :  { %1658 = vmatpush1.bf16.msra.mxu0 %v5589_v16  ;;  %1830 = vmatpush1.bf16.msra.mxu1 %v5592_v17  ;;  %v5688_v16 = vld [vmem:[#allocation7 + $0x144] ss:$16 sps:$4 sm:$0xff]   ;;  %v5691_v17 = vld [vmem:[#allocation7 + $0x14c] ss:$16 sps:$4 sm:$0xff]  }
 0x126   :  { %1659 = vmatprep.subr.bf16.mxu0 %v5597_v19  ;;  %1831 = vmatprep.subr.bf16.mxu1 %v5600_v20  ;;  %v5689_v19 = vld [vmem:[#allocation7 + $0x148] ss:$16 sps:$4 sm:$0xff]   ;;  %v5694_v20 = vld [vmem:[#allocation7 + $0x164] ss:$16 sps:$4 sm:$0xff]  }
 0x129   :  { %1660 = vmatpush1.bf16.msra.mxu0 %v5595_v21  ;;  %1832 = vmatpush1.bf16.msra.mxu1 %v5598_v22  ;;  %v5697_v21 = vld [vmem:[#allocation7 + $0x16c] ss:$16 sps:$4 sm:$0xff]   ;;  %v5692_v22 = vld [vmem:[#allocation7 + $0x160] ss:$16 sps:$4 sm:$0xff]  }
 0x12a   :  { %1661 = vmatprep.subr.bf16.mxu0 %v5603_v23  ;;  %1833 = vmatprep.subr.bf16.mxu1 %v5606_v24  ;;  %v5695_v23 = vld [vmem:[#allocation7 + $0x168] ss:$16 sps:$4 sm:$0xff]   ;;  %v5700_v24 = vld [vmem:[#allocation7 + $0x184] ss:$16 sps:$4 sm:$0xff]  }
 0x12d   :  { %1662 = vmatpush1.bf16.msra.mxu0 %v5601_v25  ;;  %1834 = vmatpush1.bf16.msra.mxu1 %v5604_v26  ;;  %v5703_v25 = vld [vmem:[#allocation7 + $0x18c] ss:$16 sps:$4 sm:$0xff]   ;;  %v5698_v26 = vld [vmem:[#allocation7 + $0x180] ss:$16 sps:$4 sm:$0xff]  }
 0x12e   :  { %1663 = vmatprep.subr.bf16.mxu0 %v5609_v27  ;;  %1835 = vmatprep.subr.bf16.mxu1 %v5612_v28  ;;  %v5701_v27 = vld [vmem:[#allocation7 + $0x188] ss:$16 sps:$4 sm:$0xff]   ;;  %v5706_v28 = vld [vmem:[#allocation7 + $0x1a4] ss:$16 sps:$4 sm:$0xff]  }
 0x131   :  { %1664 = vmatpush1.bf16.msra.mxu0 %v5607_v29  ;;  %1836 = vmatpush1.bf16.msra.mxu1 %v5610_v30  ;;  %v5709_v29 = vld [vmem:[#allocation7 + $0x1ac] ss:$16 sps:$4 sm:$0xff]   ;;  %v5704_v30 = vld [vmem:[#allocation7 + $0x1a0] ss:$16 sps:$4 sm:$0xff]  }
 0x132   :  { %1665 = vmatprep.subr.bf16.mxu0 %v5615_v31  ;;  %1837 = vmatprep.subr.bf16.mxu1 %v5618_v32  ;;  %v5707_v31 = vld [vmem:[#allocation7 + $0x1a8] ss:$16 sps:$4 sm:$0xff]   ;;  %v5712_v32 = vld [vmem:[#allocation7 + $0x1c4] ss:$16 sps:$4 sm:$0xff]  }
 0x135   :  { %1666 = vmatpush1.bf16.msra.mxu0 %v5613_v33  ;;  %1838 = vmatpush1.bf16.msra.mxu1 %v5616_v34  ;;  %v5715_v33 = vld [vmem:[#allocation7 + $0x1cc] ss:$16 sps:$4 sm:$0xff]   ;;  %v5710_v34 = vld [vmem:[#allocation7 + $0x1c0] ss:$16 sps:$4 sm:$0xff]  }
 0x136   :  { %1667 = vmatprep.subr.bf16.mxu0 %v5621_v35  ;;  %1839 = vmatprep.subr.bf16.mxu1 %v5624_v36  ;;  %v5713_v35 = vld [vmem:[#allocation7 + $0x1c8] ss:$16 sps:$4 sm:$0xff]   ;;  %v5718_v36 = vld [vmem:[#allocation7 + $0x1e4] ss:$16 sps:$4 sm:$0xff]  }
 0x139   :  { %1668 = vmatpush1.bf16.msra.mxu0 %v5619_v37  ;;  %1840 = vmatpush1.bf16.msra.mxu1 %v5622_v38  ;;  %v5721_v37 = vld [vmem:[#allocation7 + $0x1ec] ss:$16 sps:$4 sm:$0xff]   ;;  %v5716_v38 = vld [vmem:[#allocation7 + $0x1e0] ss:$16 sps:$4 sm:$0xff]  }
 0x13a   :  { %2670 = vmatprep.subr.bf16.mxu0 %v5628_v39  ;;  %2756 = vmatprep.subr.bf16.mxu1 %v5631_v40  ;;  %v5719_v39 = vld [vmem:[#allocation7 + $0x1e8] ss:$16 sps:$4 sm:$0xff]   ;;  %v5724_v40 = vld [vmem:[#allocation7 + $0x204] ss:$16 sps:$4 sm:$0xff]  }
 0x13c   :  { %1686 = vmatmul.mubr.bf16.vlgmr.msra.gmra.mrb[0].mxu0 %v5625_v41  ;;  %1858 = vmatmul.mubr.bf16.vlgmr.msra.gmra.mrb[0].mxu1 %v5625_v41  ;;  %v5727_v41 = vld [vmem:[#allocation7 + $0x20c] ss:$16 sps:$4 sm:$0xff]  }
 0x13d   :  { %2671 = vmatpush1.bf16.msra.mxu0 %v5626_v42  ;;  %2757 = vmatpush1.bf16.msra.mxu1 %v5629_v43  ;;  %v348_v42 = vlaneseq }
 0x13e   :  { %2672 = vmatprep.subr.bf16.mxu0 %v5634_v44  ;;  %2758 = vmatprep.subr.bf16.mxu1 %v5637_v45 }
 0x13f   :  { %v6361_v43 = vshrl.u32 %v348_v42, 7  ;;  %v5761_v42 = vld [vmem:[#allocation7 + $0x2c8] ss:$16 sps:$4 sm:$0xff]  }
 0x141   :  { %2673 = vmatpush1.bf16.msra.mxu0 %v5632_v46  ;;  %2759 = vmatpush1.bf16.msra.mxu1 %v5635_v47  ;;  %v6364_v44 = vsub.s32 0, %v6361_v43  ;;  %v6367_v45 = vsub.s32 2, %v6361_v43  ;;  %v346_v46 = vld [vmem:[%s6560_s2] sm:$0xf]  ;;  %v6373_v47 = vsub.s32 1, %v6361_v43 }
 0x142   :  { %2674 = vmatprep.subr.bf16.mxu0 %v5640_v48  ;;  %2760 = vmatprep.subr.bf16.mxu1 %v5643_v49  ;;  %v6376_v48 = vsub.s32 3, %v6361_v43 }
 0x143   :  { %v351_v49 = vrot.slane %v346_v46, %v6364_v44 }
 0x145   :  { %2675 = vmatpush1.bf16.msra.mxu0 %v5638_v50  ;;  %2761 = vmatpush1.bf16.msra.mxu1 %v5641_v51  ;;  %v359_v50 = vrot.slane %v346_v46, %v6367_v45  ;;  %v355_v51 = vrot.slane %v346_v46, %v6373_v47 }
 0x146   :  { %2676 = vmatprep.subr.bf16.mxu0 %v5646_v52  ;;  %2762 = vmatprep.subr.bf16.mxu1 %v5649_v53  ;;  %v363_v52 = vrot.slane %v346_v46, %v6376_v48  ;;  %v5766_v46 = vld [vmem:[#allocation7 + $0x2e4] ss:$16 sps:$4 sm:$0xff]  }
 0x149   :  { %2677 = vmatpush1.bf16.msra.mxu0 %v5644_v54  ;;  %2763 = vmatpush1.bf16.msra.mxu1 %v5647_v55 }
 0x14a   :  { %2678 = vmatprep.subr.bf16.mxu0 %v5652_v56  ;;  %2764 = vmatprep.subr.bf16.mxu1 %v5655_v57 }
 0x14d   :  { %2679 = vmatpush1.bf16.msra.mxu0 %v5650_v58  ;;  %2765 = vmatpush1.bf16.msra.mxu1 %v5653_v59 }
 0x14e   :  { %2680 = vmatprep.subr.bf16.mxu0 %v5658_v60  ;;  %2766 = vmatprep.subr.bf16.mxu1 %v5661_v61 }
 0x151   :  { %2681 = vmatpush1.bf16.msra.mxu0 %v5656_v62  ;;  %2767 = vmatpush1.bf16.msra.mxu1 %v5659_v63 }
 0x152   :  { %2682 = vmatprep.subr.bf16.mxu0 %v5664_v0  ;;  %2768 = vmatprep.subr.bf16.mxu1 %v5667_v1 }
 0x155   :  { %2683 = vmatpush1.bf16.msra.mxu0 %v5662_v2  ;;  %2769 = vmatpush1.bf16.msra.mxu1 %v5665_v3 }
 0x156   :  { %2684 = vmatprep.subr.bf16.mxu0 %v5670_v4  ;;  %2770 = vmatprep.subr.bf16.mxu1 %v5673_v5 }
 0x159   :  { %2685 = vmatpush1.bf16.msra.mxu0 %v5668_v6  ;;  %2771 = vmatpush1.bf16.msra.mxu1 %v5671_v7 }
 0x15a   :  { %2686 = vmatprep.subr.bf16.mxu0 %v5676_v8  ;;  %2772 = vmatprep.subr.bf16.mxu1 %v5679_v9 }
 0x15d   :  { %2687 = vmatpush1.bf16.msra.mxu0 %v5674_v10  ;;  %2773 = vmatpush1.bf16.msra.mxu1 %v5677_v11 }
 0x15e   :  { %2688 = vmatprep.subr.bf16.mxu0 %v5682_v12  ;;  %2774 = vmatprep.subr.bf16.mxu1 %v5685_v13 }
 0x161   :  { %2689 = vmatpush1.bf16.msra.mxu0 %v5680_v14  ;;  %2775 = vmatpush1.bf16.msra.mxu1 %v5683_v15 }
 0x162   :  { %2690 = vmatprep.subr.bf16.mxu0 %v5688_v16  ;;  %2776 = vmatprep.subr.bf16.mxu1 %v5691_v17  ;;  %v5722_v17 = vld [vmem:[#allocation7 + $0x200] ss:$16 sps:$4 sm:$0xff]  }
 0x165   :  { %2691 = vmatpush1.bf16.msra.mxu0 %v5686_v18  ;;  %2777 = vmatpush1.bf16.msra.mxu1 %v5689_v19  ;;  %v5725_v18 = vld [vmem:[#allocation7 + $0x208] ss:$16 sps:$4 sm:$0xff]   ;;  %v5730_v19 = vld [vmem:[#allocation7 + $0x224] ss:$16 sps:$4 sm:$0xff]  }
 0x166   :  { %2692 = vmatprep.subr.bf16.mxu0 %v5694_v20  ;;  %2778 = vmatprep.subr.bf16.mxu1 %v5697_v21  ;;  %v5733_v20 = vld [vmem:[#allocation7 + $0x22c] ss:$16 sps:$4 sm:$0xff]   ;;  %v5728_v21 = vld [vmem:[#allocation7 + $0x220] ss:$16 sps:$4 sm:$0xff]  }
 0x169   :  { %2693 = vmatpush1.bf16.msra.mxu0 %v5692_v22  ;;  %2779 = vmatpush1.bf16.msra.mxu1 %v5695_v23  ;;  %v5731_v22 = vld [vmem:[#allocation7 + $0x228] ss:$16 sps:$4 sm:$0xff]   ;;  %v5736_v23 = vld [vmem:[#allocation7 + $0x244] ss:$16 sps:$4 sm:$0xff]  }
 0x16a   :  { %2694 = vmatprep.subr.bf16.mxu0 %v5700_v24  ;;  %2780 = vmatprep.subr.bf16.mxu1 %v5703_v25  ;;  %v5739_v24 = vld [vmem:[#allocation7 + $0x24c] ss:$16 sps:$4 sm:$0xff]   ;;  %v5734_v25 = vld [vmem:[#allocation7 + $0x240] ss:$16 sps:$4 sm:$0xff]  }
 0x16d   :  { %2695 = vmatpush1.bf16.msra.mxu0 %v5698_v26  ;;  %2781 = vmatpush1.bf16.msra.mxu1 %v5701_v27  ;;  %v5737_v26 = vld [vmem:[#allocation7 + $0x248] ss:$16 sps:$4 sm:$0xff]   ;;  %v5742_v27 = vld [vmem:[#allocation7 + $0x264] ss:$16 sps:$4 sm:$0xff]  }
 0x16e   :  { %2696 = vmatprep.subr.bf16.mxu0 %v5706_v28  ;;  %2782 = vmatprep.subr.bf16.mxu1 %v5709_v29  ;;  %v5745_v28 = vld [vmem:[#allocation7 + $0x26c] ss:$16 sps:$4 sm:$0xff]   ;;  %v5740_v29 = vld [vmem:[#allocation7 + $0x260] ss:$16 sps:$4 sm:$0xff]  }
 0x171   :  { %2697 = vmatpush1.bf16.msra.mxu0 %v5704_v30  ;;  %2783 = vmatpush1.bf16.msra.mxu1 %v5707_v31  ;;  %v5743_v30 = vld [vmem:[#allocation7 + $0x268] ss:$16 sps:$4 sm:$0xff]   ;;  %v5748_v31 = vld [vmem:[#allocation7 + $0x284] ss:$16 sps:$4 sm:$0xff]  }
 0x172   :  { %2698 = vmatprep.subr.bf16.mxu0 %v5712_v32  ;;  %2784 = vmatprep.subr.bf16.mxu1 %v5715_v33  ;;  %v5751_v32 = vld [vmem:[#allocation7 + $0x28c] ss:$16 sps:$4 sm:$0xff]   ;;  %v5746_v33 = vld [vmem:[#allocation7 + $0x280] ss:$16 sps:$4 sm:$0xff]  }
 0x175   :  { %2699 = vmatpush1.bf16.msra.mxu0 %v5710_v34  ;;  %2785 = vmatpush1.bf16.msra.mxu1 %v5713_v35  ;;  %v5749_v34 = vld [vmem:[#allocation7 + $0x288] ss:$16 sps:$4 sm:$0xff]   ;;  %v5754_v35 = vld [vmem:[#allocation7 + $0x2a4] ss:$16 sps:$4 sm:$0xff]  }
 0x176   :  { %2700 = vmatprep.subr.bf16.mxu0 %v5718_v36  ;;  %2786 = vmatprep.subr.bf16.mxu1 %v5721_v37  ;;  %v5757_v36 = vld [vmem:[#allocation7 + $0x2ac] ss:$16 sps:$4 sm:$0xff]   ;;  %v5752_v37 = vld [vmem:[#allocation7 + $0x2a0] ss:$16 sps:$4 sm:$0xff]  }
 0x179   :  { %2701 = vmatpush1.bf16.msra.mxu0 %v5716_v38  ;;  %2787 = vmatpush1.bf16.msra.mxu1 %v5719_v39  ;;  %v5755_v38 = vld [vmem:[#allocation7 + $0x2a8] ss:$16 sps:$4 sm:$0xff]   ;;  %v5760_v39 = vld [vmem:[#allocation7 + $0x2c4] ss:$16 sps:$4 sm:$0xff]  }
 0x17a   :  { %2713 = vmatprep.subr.bf16.mxu0 %v5724_v40  ;;  %2799 = vmatprep.subr.bf16.mxu1 %v5727_v41  ;;  %v5763_v40 = vld [vmem:[#allocation7 + $0x2cc] ss:$16 sps:$4 sm:$0xff]   ;;  %v5758_v41 = vld [vmem:[#allocation7 + $0x2c0] ss:$16 sps:$4 sm:$0xff]  }
 0x20f   :  { %v1687_v53 = vpop.f32.mrb[0].mxu0  ;;  %v1859_v54 = vpop.f32.mrb[0].mxu1 }
 0x210   :  { %v5200_v55 = vadd.f32 %v1687_v53, %v351_v49  ;;  %v5204_v56 = vadd.f32 %v1859_v54, %v359_v50  ;;  %v1689_v57 = vpop.f32.mrb[1].mxu0  ;;  %v1861_v58 = vpop.f32.mrb[1].mxu1  ;;  %v5775_v53 = vld [vmem:[#allocation7 + $0x30c] ss:$16 sps:$4 sm:$0xff]   ;;  %v5770_v54 = vld [vmem:[#allocation7 + $0x300] ss:$16 sps:$4 sm:$0xff]  }
 0x211   :  { %v5201_v59 = vadd.f32 %v1689_v57, %v355_v51  ;;  %v5205_v60 = vadd.f32 %v1861_v58, %v363_v52  ;;  %v1691_v61 = vpop.f32.mrb[2].mxu0  ;;  %v1863_v62 = vpop.f32.mrb[2].mxu1  ;;  %v5781_v57 = vld [vmem:[#allocation7 + $0x32c] ss:$16 sps:$4 sm:$0xff]   ;;  %v5776_v58 = vld [vmem:[#allocation7 + $0x320] ss:$16 sps:$4 sm:$0xff]  }
 0x212   :  { %v5202_v63 = vadd.f32 %v1691_v61, %v351_v49  ;;  %v5206_v0 = vadd.f32 %v1863_v62, %v359_v50  ;;  %v1693_v1 = vpop.f32.mrb[3].mxu0  ;;  %v1865_v2 = vpop.f32.mrb[3].mxu1  ;;  %v1868_v5 = vmax.f32 %v5200_v55, 0.0  ;;  %v1870_v6 = vmax.f32 %v5204_v56, 0.0  ;;  %v5769_v49 = vld [vmem:[#allocation7 + $0x2ec] ss:$16 sps:$4 sm:$0xff]  }
 0x213   :  { %v5203_v3 = vadd.f32 %v1693_v1, %v355_v51  ;;  %v5207_v4 = vadd.f32 %v1865_v2, %v363_v52  ;;  %v1869_v9 = vmax.f32 %v5201_v59, 0.0  ;;  %v1871_v10 = vmax.f32 %v5205_v60, 0.0  ;;  %v5764_v50 = vld [vmem:[#allocation7 + $0x2e0] ss:$16 sps:$4 sm:$0xff]   ;;  %v5767_v51 = vld [vmem:[#allocation7 + $0x2e8] ss:$16 sps:$4 sm:$0xff]  }
 0x214   :  { %v1872_v7 = vmax.f32 %v5202_v63, 0.0  ;;  %v1874_v8 = vmax.f32 %v5206_v0, 0.0  ;;  %v5772_v52 = vld [vmem:[#allocation7 + $0x304] ss:$16 sps:$4 sm:$0xff]   ;;  %v5773_v55 = vld [vmem:[#allocation7 + $0x308] ss:$16 sps:$4 sm:$0xff]  }
 0x215   :  { %v1873_v11 = vmax.f32 %v5203_v3, 0.0  ;;  %v1875_v12 = vmax.f32 %v5207_v4, 0.0  ;;  %v5778_v56 = vld [vmem:[#allocation7 + $0x324] ss:$16 sps:$4 sm:$0xff]   ;;  %v5779_v59 = vld [vmem:[#allocation7 + $0x328] ss:$16 sps:$4 sm:$0xff]  }
 0x216   :  { %v1876_v13 = vpack.c.bf16 %v1872_v7, %v1868_v5  ;;  %v6382_v14 = vpack.c.bf16 %v1874_v8, %v1870_v6  ;;  %v5784_v60 = vld [vmem:[#allocation7 + $0x344] ss:$16 sps:$4 sm:$0xff]   ;;  %v5787_v61 = vld [vmem:[#allocation7 + $0x34c] ss:$16 sps:$4 sm:$0xff]   ;;  %v5782_v62 = vld [vmem:[#allocation7 + $0x340] ss:$16 sps:$4 sm:$0xff]  }
 0x217   :  { %v1877_v15 = vpack.c.bf16 %v1873_v11, %v1869_v9  ;;  %v1879_v16 = vpack.c.bf16 %v1875_v12, %v1871_v10  ;;  %v5785_v63 = vld [vmem:[#allocation7 + $0x348] ss:$16 sps:$4 sm:$0xff]   ;;  %v5790_v0 = vld [vmem:[#allocation7 + $0x364] ss:$16 sps:$4 sm:$0xff]   ;;  %v5793_v1 = vld [vmem:[#allocation7 + $0x36c] ss:$16 sps:$4 sm:$0xff]  }
 0x218   :  { %v5788_v2 = vld [vmem:[#allocation7 + $0x360] ss:$16 sps:$4 sm:$0xff]   ;;  %v5791_v3 = vld [vmem:[#allocation7 + $0x368] ss:$16 sps:$4 sm:$0xff]   ;;  %v5796_v4 = vld [vmem:[#allocation7 + $0x384] ss:$16 sps:$4 sm:$0xff]  }
 0x219   :  { %2702 = vmatprep.mubr.bf16.mxu0 %v1877_v15  ;;  %2788 = vmatprep.mubr.bf16.mxu1 %v1877_v15  ;;  %v5799_v5 = vld [vmem:[#allocation7 + $0x38c] ss:$16 sps:$4 sm:$0xff]   ;;  %v5794_v6 = vld [vmem:[#allocation7 + $0x380] ss:$16 sps:$4 sm:$0xff]   ;;  %v5797_v7 = vld [vmem:[#allocation7 + $0x388] ss:$16 sps:$4 sm:$0xff]  }
 0x21a   :  { %2703 = vmatmul.mubr.bf16.vlgmr.msra.gmra.mrb[4].mxu0 %v1876_v13  ;;  %2789 = vmatmul.mubr.bf16.vlgmr.msra.gmra.mrb[4].mxu1 %v1876_v13  ;;  %v5802_v8 = vld [vmem:[#allocation7 + $0x3a4] ss:$16 sps:$4 sm:$0xff]   ;;  %v5805_v9 = vld [vmem:[#allocation7 + $0x3ac] ss:$16 sps:$4 sm:$0xff]   ;;  %v5800_v10 = vld [vmem:[#allocation7 + $0x3a0] ss:$16 sps:$4 sm:$0xff]  }
 0x21b   :  { %2714 = vmatpush1.bf16.msra.mxu0 %v5722_v17  ;;  %2800 = vmatpush1.bf16.msra.mxu1 %v5725_v18  ;;  %v5803_v11 = vld [vmem:[#allocation7 + $0x3a8] ss:$16 sps:$4 sm:$0xff]   ;;  %v5808_v12 = vld [vmem:[#allocation7 + $0x3c4] ss:$16 sps:$4 sm:$0xff]   ;;  %v5811_v13 = vld [vmem:[#allocation7 + $0x3cc] ss:$16 sps:$4 sm:$0xff]  }
 0x21c   :  { %2745 = vmatprep.mubr.bf16.mxu0 %v1879_v16  ;;  %2831 = vmatprep.mubr.bf16.mxu1 %v1879_v16  ;;  %v5806_v15 = vld [vmem:[#allocation7 + $0x3c0] ss:$16 sps:$4 sm:$0xff]   ;;  %v5809_v16 = vld [vmem:[#allocation7 + $0x3c8] ss:$16 sps:$4 sm:$0xff]   ;;  %v5814_v17 = vld [vmem:[#allocation7 + $0x3e4] ss:$16 sps:$4 sm:$0xff]  }
 0x21d   :  { %2715 = vmatprep.subr.bf16.mxu0 %v5730_v19  ;;  %2801 = vmatprep.subr.bf16.mxu1 %v5733_v20  ;;  %v5817_v18 = vld [vmem:[#allocation7 + $0x3ec] ss:$16 sps:$4 sm:$0xff]   ;;  %v5812_v19 = vld [vmem:[#allocation7 + $0x3e0] ss:$16 sps:$4 sm:$0xff]   ;;  %v5815_v20 = vld [vmem:[#allocation7 + $0x3e8] ss:$16 sps:$4 sm:$0xff]  }
 0x21f   :  { %2716 = vmatpush1.bf16.msra.mxu0 %v5728_v21  ;;  %2802 = vmatpush1.bf16.msra.mxu1 %v5731_v22  ;;  %v5820_v21 = vld [vmem:[#allocation8 + $0x4] ss:$16 sps:$4 sm:$0xff]   ;;  %v5823_v22 = vld [vmem:[#allocation8 + $0xc] ss:$16 sps:$4 sm:$0xff]  }
 0x220   :  { %2717 = vmatprep.subr.bf16.mxu0 %v5736_v23  ;;  %2803 = vmatprep.subr.bf16.mxu1 %v5739_v24  ;;  %v5818_v23 = vld [vmem:[#allocation8] ss:$16 sps:$4 sm:$0xff]   ;;  %v5821_v24 = vld [vmem:[#allocation8 + $0x8] ss:$16 sps:$4 sm:$0xff]  }
 0x223   :  { %2718 = vmatpush1.bf16.msra.mxu0 %v5734_v25  ;;  %2804 = vmatpush1.bf16.msra.mxu1 %v5737_v26  ;;  %v5826_v25 = vld [vmem:[#allocation8 + $0x24] ss:$16 sps:$4 sm:$0xff]   ;;  %v5829_v26 = vld [vmem:[#allocation8 + $0x2c] ss:$16 sps:$4 sm:$0xff]  }
 0x224   :  { %2719 = vmatprep.subr.bf16.mxu0 %v5742_v27  ;;  %2805 = vmatprep.subr.bf16.mxu1 %v5745_v28  ;;  %v5824_v27 = vld [vmem:[#allocation8 + $0x20] ss:$16 sps:$4 sm:$0xff]   ;;  %v5827_v28 = vld [vmem:[#allocation8 + $0x28] ss:$16 sps:$4 sm:$0xff]  }
 0x227   :  { %2720 = vmatpush1.bf16.msra.mxu0 %v5740_v29  ;;  %2806 = vmatpush1.bf16.msra.mxu1 %v5743_v30  ;;  %v5832_v29 = vld [vmem:[#allocation8 + $0x44] ss:$16 sps:$4 sm:$0xff]   ;;  %v5835_v30 = vld [vmem:[#allocation8 + $0x4c] ss:$16 sps:$4 sm:$0xff]  }
 0x228   :  { %2721 = vmatprep.subr.bf16.mxu0 %v5748_v31  ;;  %2807 = vmatprep.subr.bf16.mxu1 %v5751_v32  ;;  %v5830_v31 = vld [vmem:[#allocation8 + $0x40] ss:$16 sps:$4 sm:$0xff]   ;;  %v5838_v32 = vld [vmem:[#allocation8 + $0x64] ss:$16 sps:$4 sm:$0xff]  }
 0x22b   :  { %2722 = vmatpush1.bf16.msra.mxu0 %v5746_v33  ;;  %2808 = vmatpush1.bf16.msra.mxu1 %v5749_v34  ;;  %v5841_v33 = vld [vmem:[#allocation8 + $0x6c] ss:$16 sps:$4 sm:$0xff]   ;;  %v5836_v34 = vld [vmem:[#allocation8 + $0x60] ss:$16 sps:$4 sm:$0xff]  }
 0x22c   :  { %2723 = vmatprep.subr.bf16.mxu0 %v5754_v35  ;;  %2809 = vmatprep.subr.bf16.mxu1 %v5757_v36  ;;  %v5839_v35 = vld [vmem:[#allocation8 + $0x68] ss:$16 sps:$4 sm:$0xff]   ;;  %v5844_v36 = vld [vmem:[#allocation8 + $0x84] ss:$16 sps:$4 sm:$0xff]  }
 0x22f   :  { %2724 = vmatpush1.bf16.msra.mxu0 %v5752_v37  ;;  %2810 = vmatpush1.bf16.msra.mxu1 %v5755_v38  ;;  %v5847_v37 = vld [vmem:[#allocation8 + $0x8c] ss:$16 sps:$4 sm:$0xff]   ;;  %v5842_v38 = vld [vmem:[#allocation8 + $0x80] ss:$16 sps:$4 sm:$0xff]  }
 0x230   :  { %2725 = vmatprep.subr.bf16.mxu0 %v5760_v39  ;;  %2811 = vmatprep.subr.bf16.mxu1 %v5763_v40  ;;  %v5845_v39 = vld [vmem:[#allocation8 + $0x88] ss:$16 sps:$4 sm:$0xff]   ;;  %v5850_v40 = vld [vmem:[#allocation8 + $0xa4] ss:$16 sps:$4 sm:$0xff]  }
 0x233   :  { %2726 = vmatpush1.bf16.msra.mxu0 %v5758_v41  ;;  %2812 = vmatpush1.bf16.msra.mxu1 %v5761_v42  ;;  %v5853_v41 = vld [vmem:[#allocation8 + $0xac] ss:$16 sps:$4 sm:$0xff]   ;;  %v5848_v42 = vld [vmem:[#allocation8 + $0xa0] ss:$16 sps:$4 sm:$0xff]  }
 0x234   :  { %2727 = vmatprep.subr.bf16.mxu0 %v5766_v46  ;;  %2813 = vmatprep.subr.bf16.mxu1 %v5769_v49  ;;  %v5851_v46 = vld [vmem:[#allocation8 + $0xa8] ss:$16 sps:$4 sm:$0xff]   ;;  %v5856_v49 = vld [vmem:[#allocation8 + $0xc4] ss:$16 sps:$4 sm:$0xff]  }
 0x237   :  { %2728 = vmatpush1.bf16.msra.mxu0 %v5764_v50  ;;  %2814 = vmatpush1.bf16.msra.mxu1 %v5767_v51  ;;  %v5859_v50 = vld [vmem:[#allocation8 + $0xcc] ss:$16 sps:$4 sm:$0xff]   ;;  %v5854_v51 = vld [vmem:[#allocation8 + $0xc0] ss:$16 sps:$4 sm:$0xff]  }
 0x238   :  { %2729 = vmatprep.subr.bf16.mxu0 %v5772_v52  ;;  %2815 = vmatprep.subr.bf16.mxu1 %v5775_v53  ;;  %v5857_v52 = vld [vmem:[#allocation8 + $0xc8] ss:$16 sps:$4 sm:$0xff]   ;;  %v5862_v53 = vld [vmem:[#allocation8 + $0xe4] ss:$16 sps:$4 sm:$0xff]  }
 0x23b   :  { %2730 = vmatpush1.bf16.msra.mxu0 %v5770_v54  ;;  %2816 = vmatpush1.bf16.msra.mxu1 %v5773_v55  ;;  %v5865_v54 = vld [vmem:[#allocation8 + $0xec] ss:$16 sps:$4 sm:$0xff]   ;;  %v5860_v55 = vld [vmem:[#allocation8 + $0xe0] ss:$16 sps:$4 sm:$0xff]  }
 0x23c   :  { %2731 = vmatprep.subr.bf16.mxu0 %v5778_v56  ;;  %2817 = vmatprep.subr.bf16.mxu1 %v5781_v57  ;;  %v5863_v56 = vld [vmem:[#allocation8 + $0xe8] ss:$16 sps:$4 sm:$0xff]   ;;  %v5868_v57 = vld [vmem:[#allocation8 + $0x104] ss:$16 sps:$4 sm:$0xff]  }
 0x23f   :  { %2732 = vmatpush1.bf16.msra.mxu0 %v5776_v58  ;;  %2818 = vmatpush1.bf16.msra.mxu1 %v5779_v59  ;;  %v5871_v58 = vld [vmem:[#allocation8 + $0x10c] ss:$16 sps:$4 sm:$0xff]   ;;  %v5866_v59 = vld [vmem:[#allocation8 + $0x100] ss:$16 sps:$4 sm:$0xff]  }
 0x240   :  { %2733 = vmatprep.subr.bf16.mxu0 %v5784_v60  ;;  %2819 = vmatprep.subr.bf16.mxu1 %v5787_v61  ;;  %v5869_v60 = vld [vmem:[#allocation8 + $0x108] ss:$16 sps:$4 sm:$0xff]   ;;  %v5874_v61 = vld [vmem:[#allocation8 + $0x124] ss:$16 sps:$4 sm:$0xff]  }
 0x243   :  { %2734 = vmatpush1.bf16.msra.mxu0 %v5782_v62  ;;  %2820 = vmatpush1.bf16.msra.mxu1 %v5785_v63  ;;  %v5877_v62 = vld [vmem:[#allocation8 + $0x12c] ss:$16 sps:$4 sm:$0xff]   ;;  %v5872_v63 = vld [vmem:[#allocation8 + $0x120] ss:$16 sps:$4 sm:$0xff]  }
 0x244   :  { %2735 = vmatprep.subr.bf16.mxu0 %v5790_v0  ;;  %2821 = vmatprep.subr.bf16.mxu1 %v5793_v1  ;;  %v5875_v0 = vld [vmem:[#allocation8 + $0x128] ss:$16 sps:$4 sm:$0xff]   ;;  %v5880_v1 = vld [vmem:[#allocation8 + $0x144] ss:$16 sps:$4 sm:$0xff]  }
 0x247   :  { %2736 = vmatpush1.bf16.msra.mxu0 %v5788_v2  ;;  %2822 = vmatpush1.bf16.msra.mxu1 %v5791_v3  ;;  %v5883_v2 = vld [vmem:[#allocation8 + $0x14c] ss:$16 sps:$4 sm:$0xff]   ;;  %v5878_v3 = vld [vmem:[#allocation8 + $0x140] ss:$16 sps:$4 sm:$0xff]  }
 0x248   :  { %2737 = vmatprep.subr.bf16.mxu0 %v5796_v4  ;;  %2823 = vmatprep.subr.bf16.mxu1 %v5799_v5  ;;  %v5881_v4 = vld [vmem:[#allocation8 + $0x148] ss:$16 sps:$4 sm:$0xff]   ;;  %v5886_v5 = vld [vmem:[#allocation8 + $0x164] ss:$16 sps:$4 sm:$0xff]  }
 0x24b   :  { %2738 = vmatpush1.bf16.msra.mxu0 %v5794_v6  ;;  %2824 = vmatpush1.bf16.msra.mxu1 %v5797_v7  ;;  %v5889_v6 = vld [vmem:[#allocation8 + $0x16c] ss:$16 sps:$4 sm:$0xff]   ;;  %v5884_v7 = vld [vmem:[#allocation8 + $0x160] ss:$16 sps:$4 sm:$0xff]  }
 0x24c   :  { %2739 = vmatprep.subr.bf16.mxu0 %v5802_v8  ;;  %2825 = vmatprep.subr.bf16.mxu1 %v5805_v9  ;;  %v5887_v8 = vld [vmem:[#allocation8 + $0x168] ss:$16 sps:$4 sm:$0xff]   ;;  %v5892_v9 = vld [vmem:[#allocation8 + $0x184] ss:$16 sps:$4 sm:$0xff]  }
 0x24f   :  { %2740 = vmatpush1.bf16.msra.mxu0 %v5800_v10  ;;  %2826 = vmatpush1.bf16.msra.mxu1 %v5803_v11  ;;  %v5895_v10 = vld [vmem:[#allocation8 + $0x18c] ss:$16 sps:$4 sm:$0xff]   ;;  %v5890_v11 = vld [vmem:[#allocation8 + $0x180] ss:$16 sps:$4 sm:$0xff]  }
 0x250   :  { %2741 = vmatprep.subr.bf16.mxu0 %v5808_v12  ;;  %2827 = vmatprep.subr.bf16.mxu1 %v5811_v13  ;;  %v5893_v12 = vld [vmem:[#allocation8 + $0x188] ss:$16 sps:$4 sm:$0xff]   ;;  %v5896_v13 = vld [vmem:[#allocation8 + $0x1a0] ss:$16 sps:$4 sm:$0xff]  }
 0x253   :  { %2742 = vmatpush1.bf16.msra.mxu0 %v5806_v15  ;;  %2828 = vmatpush1.bf16.msra.mxu1 %v5809_v16  ;;  %v5898_v15 = vld [vmem:[#allocation8 + $0x1a4] ss:$16 sps:$4 sm:$0xff]   ;;  %v5899_v16 = vld [vmem:[#allocation8 + $0x1a8] ss:$16 sps:$4 sm:$0xff]  }
 0x254   :  { %2743 = vmatprep.subr.bf16.mxu0 %v5814_v17  ;;  %2829 = vmatprep.subr.bf16.mxu1 %v5817_v18  ;;  %v5901_v17 = vld [vmem:[#allocation8 + $0x1ac] ss:$16 sps:$4 sm:$0xff]   ;;  %v5904_v18 = vld [vmem:[#allocation8 + $0x1c4] ss:$16 sps:$4 sm:$0xff]  }
 0x257   :  { %2744 = vmatpush1.bf16.msra.mxu0 %v5812_v19  ;;  %2830 = vmatpush1.bf16.msra.mxu1 %v5815_v20  ;;  %v5907_v19 = vld [vmem:[#allocation8 + $0x1cc] ss:$16 sps:$4 sm:$0xff]   ;;  %v5902_v20 = vld [vmem:[#allocation8 + $0x1c0] ss:$16 sps:$4 sm:$0xff]  }
 0x258   :  { %3856 = vmatprep.subr.bf16.mxu0 %v5820_v21  ;;  %3942 = vmatprep.subr.bf16.mxu1 %v5823_v22  ;;  %v5905_v21 = vld [vmem:[#allocation8 + $0x1c8] ss:$16 sps:$4 sm:$0xff]   ;;  %v5910_v22 = vld [vmem:[#allocation8 + $0x1e4] ss:$16 sps:$4 sm:$0xff]  }
 0x25a   :  { %2746 = vmatmul.mubr.bf16.vlgmr.msra.gmra.mrb[4].mxu0 %v6382_v14  ;;  %2832 = vmatmul.mubr.bf16.vlgmr.msra.gmra.mrb[4].mxu1 %v6382_v14  ;;  %v5833_v14 = vld [vmem:[#allocation8 + $0x48] ss:$16 sps:$4 sm:$0xff]  }
 0x25b   :  { %3857 = vmatpush1.bf16.msra.mxu0 %v5818_v23  ;;  %3943 = vmatpush1.bf16.msra.mxu1 %v5821_v24  ;;  %v5913_v23 = vld [vmem:[#allocation8 + $0x1ec] ss:$16 sps:$4 sm:$0xff]   ;;  %v5908_v24 = vld [vmem:[#allocation8 + $0x1e0] ss:$16 sps:$4 sm:$0xff]  }
 0x25c   :  { %3858 = vmatprep.subr.bf16.mxu0 %v5826_v25  ;;  %3944 = vmatprep.subr.bf16.mxu1 %v5829_v26  ;;  %v5911_v25 = vld [vmem:[#allocation8 + $0x1e8] ss:$16 sps:$4 sm:$0xff]   ;;  %v5916_v26 = vld [vmem:[#allocation8 + $0x204] ss:$16 sps:$4 sm:$0xff]  }
 0x25f   :  { %3859 = vmatpush1.bf16.msra.mxu0 %v5824_v27  ;;  %3945 = vmatpush1.bf16.msra.mxu1 %v5827_v28  ;;  %v5919_v27 = vld [vmem:[#allocation8 + $0x20c] ss:$16 sps:$4 sm:$0xff]   ;;  %v2008_v28 = vld [vmem:[%s6562_s4] sm:$0xf] }
 0x260   :  { %3860 = vmatprep.subr.bf16.mxu0 %v5832_v29  ;;  %3946 = vmatprep.subr.bf16.mxu1 %v5835_v30  ;;  %v2013_v29 = vrot.slane %v2008_v28, %v6364_v44  ;;  %v2021_v30 = vrot.slane %v2008_v28, %v6367_v45 }
 0x263   :  { %3861 = vmatpush1.bf16.msra.mxu0 %v5830_v31  ;;  %3947 = vmatpush1.bf16.msra.mxu1 %v5833_v14  ;;  %v2017_v31 = vrot.slane %v2008_v28, %v6373_v47  ;;  %v2025_v14 = vrot.slane %v2008_v28, %v6376_v48 }
 0x264   :  { %3862 = vmatprep.subr.bf16.mxu0 %v5838_v32  ;;  %3948 = vmatprep.subr.bf16.mxu1 %v5841_v33 }
 0x267   :  { %3863 = vmatpush1.bf16.msra.mxu0 %v5836_v34  ;;  %3949 = vmatpush1.bf16.msra.mxu1 %v5839_v35 }
 0x268   :  { %3864 = vmatprep.subr.bf16.mxu0 %v5844_v36  ;;  %3950 = vmatprep.subr.bf16.mxu1 %v5847_v37 }
 0x26b   :  { %3865 = vmatpush1.bf16.msra.mxu0 %v5842_v38  ;;  %3951 = vmatpush1.bf16.msra.mxu1 %v5845_v39 }
 0x26c   :  { %3866 = vmatprep.subr.bf16.mxu0 %v5850_v40  ;;  %3952 = vmatprep.subr.bf16.mxu1 %v5853_v41 }
 0x26f   :  { %3867 = vmatpush1.bf16.msra.mxu0 %v5848_v42  ;;  %3953 = vmatpush1.bf16.msra.mxu1 %v5851_v46 }
 0x270   :  { %3868 = vmatprep.subr.bf16.mxu0 %v5856_v49  ;;  %3954 = vmatprep.subr.bf16.mxu1 %v5859_v50 }
 0x273   :  { %3869 = vmatpush1.bf16.msra.mxu0 %v5854_v51  ;;  %3955 = vmatpush1.bf16.msra.mxu1 %v5857_v52 }
 0x274   :  { %3870 = vmatprep.subr.bf16.mxu0 %v5862_v53  ;;  %3956 = vmatprep.subr.bf16.mxu1 %v5865_v54 }
 0x277   :  { %3871 = vmatpush1.bf16.msra.mxu0 %v5860_v55  ;;  %3957 = vmatpush1.bf16.msra.mxu1 %v5863_v56 }
 0x278   :  { %3872 = vmatprep.subr.bf16.mxu0 %v5868_v57  ;;  %3958 = vmatprep.subr.bf16.mxu1 %v5871_v58 }
 0x27b   :  { %3873 = vmatpush1.bf16.msra.mxu0 %v5866_v59  ;;  %3959 = vmatpush1.bf16.msra.mxu1 %v5869_v60 }
 0x27c   :  { %3874 = vmatprep.subr.bf16.mxu0 %v5874_v61  ;;  %3960 = vmatprep.subr.bf16.mxu1 %v5877_v62 }
 0x27f   :  { %3875 = vmatpush1.bf16.msra.mxu0 %v5872_v63  ;;  %3961 = vmatpush1.bf16.msra.mxu1 %v5875_v0 }
 0x280   :  { %3876 = vmatprep.subr.bf16.mxu0 %v5880_v1  ;;  %3962 = vmatprep.subr.bf16.mxu1 %v5883_v2 }
 0x283   :  { %3877 = vmatpush1.bf16.msra.mxu0 %v5878_v3  ;;  %3963 = vmatpush1.bf16.msra.mxu1 %v5881_v4 }
 0x284   :  { %3878 = vmatprep.subr.bf16.mxu0 %v5886_v5  ;;  %3964 = vmatprep.subr.bf16.mxu1 %v5889_v6 }
 0x287   :  { %3879 = vmatpush1.bf16.msra.mxu0 %v5884_v7  ;;  %3965 = vmatpush1.bf16.msra.mxu1 %v5887_v8 }
 0x288   :  { %3880 = vmatprep.subr.bf16.mxu0 %v5892_v9  ;;  %3966 = vmatprep.subr.bf16.mxu1 %v5895_v10 }
 0x28b   :  { %3881 = vmatpush1.bf16.msra.mxu0 %v5890_v11  ;;  %3967 = vmatpush1.bf16.msra.mxu1 %v5893_v12 }
 0x28c   :  { %3882 = vmatprep.subr.bf16.mxu0 %v5898_v15  ;;  %3968 = vmatprep.subr.bf16.mxu1 %v5901_v17 }
 0x28f   :  { %3883 = vmatpush1.bf16.msra.mxu0 %v5896_v13  ;;  %3969 = vmatpush1.bf16.msra.mxu1 %v5899_v16 }
 0x290   :  { %3884 = vmatprep.subr.bf16.mxu0 %v5904_v18  ;;  %3970 = vmatprep.subr.bf16.mxu1 %v5907_v19 }
 0x293   :  { %3885 = vmatpush1.bf16.msra.mxu0 %v5902_v20  ;;  %3971 = vmatpush1.bf16.msra.mxu1 %v5905_v21 }
 0x294   :  { %3886 = vmatprep.subr.bf16.mxu0 %v5910_v22  ;;  %3972 = vmatprep.subr.bf16.mxu1 %v5913_v23 }
 0x297   :  { %3887 = vmatpush1.bf16.msra.mxu0 %v5908_v24  ;;  %3973 = vmatpush1.bf16.msra.mxu1 %v5911_v25 }
 0x298   :  { %3899 = vmatprep.subr.bf16.mxu0 %v5916_v26  ;;  %3985 = vmatprep.subr.bf16.mxu1 %v5919_v27 }
 0x32d   :  { %v2747_v32 = vpop.f32.mrb[4].mxu0  ;;  %v2833_v33 = vpop.f32.mrb[4].mxu1 }
 0x32e   :  { %v5208_v34 = vadd.f32 %v2747_v32, %v2013_v29  ;;  %v5212_v35 = vadd.f32 %v2833_v33, %v2021_v30  ;;  %v2749_v36 = vpop.f32.mrb[5].mxu0  ;;  %v2835_v37 = vpop.f32.mrb[5].mxu1 }
 0x32f   :  { %v5209_v38 = vadd.f32 %v2749_v36, %v2017_v31  ;;  %v5213_v39 = vadd.f32 %v2835_v37, %v2025_v14  ;;  %v2751_v40 = vpop.f32.mrb[6].mxu0  ;;  %v2837_v41 = vpop.f32.mrb[6].mxu1 }
 0x330   :  { %v6393_v42 = vmax.f32 %v5208_v34, 0.0  ;;  %v6395_v46 = vmax.f32 %v5212_v35, 0.0  ;;  %v5210_v49 = vadd.f32 %v2751_v40, %v2013_v29  ;;  %v5214_v50 = vadd.f32 %v2837_v41, %v2021_v30  ;;  %v2753_v51 = vpop.f32.mrb[7].mxu0  ;;  %v2839_v52 = vpop.f32.mrb[7].mxu1 }
 0x331   :  { %v6397_v53 = vmax.f32 %v5209_v38, 0.0  ;;  %v6399_v54 = vmax.f32 %v5213_v39, 0.0  ;;  %v5211_v55 = vadd.f32 %v2753_v51, %v2017_v31  ;;  %v5215_v56 = vadd.f32 %v2839_v52, %v2025_v14 }
 0x332   :  { %v2878_v57 = vmul.f32 %v6393_v42, %v6393_v42  ;;  %v2880_v58 = vmul.f32 %v6395_v46, %v6395_v46  ;;  %v6405_v59 = vmax.f32 %v5210_v49, 0.0  ;;  %v6407_v60 = vmax.f32 %v5214_v50, 0.0 }
 0x333   :  { %v2879_v61 = vmul.f32 %v6397_v53, %v6397_v53  ;;  %v2881_v62 = vmul.f32 %v6399_v54, %v6399_v54  ;;  %v6413_v63 = vmax.f32 %v5211_v55, 0.0  ;;  %v6415_v0 = vmax.f32 %v5215_v56, 0.0 }
 0x334   :  { %v2850_v1 = vadd.f32 %v6405_v59, %v6393_v42  ;;  %v2882_v2 = vmul.f32 %v6405_v59, %v6405_v59  ;;  %v2864_v3 = vadd.f32 %v6407_v60, %v6395_v46  ;;  %v2884_v4 = vmul.f32 %v6407_v60, %v6407_v60 }
 0x335   :  { %v2857_v5 = vadd.f32 %v6413_v63, %v6397_v53  ;;  %v2883_v6 = vmul.f32 %v6413_v63, %v6413_v63  ;;  %v2871_v7 = vadd.f32 %v6415_v0, %v6399_v54  ;;  %v2885_v8 = vmul.f32 %v6415_v0, %v6415_v0 }
 0x336   :  { %v2851_v9 = vrot.slane %v2850_v1, 4  ;;  %v2886_v10 = vadd.f32 %v2882_v2, %v2878_v57  ;;  %v2865_v11 = vrot.slane %v2864_v3, 4  ;;  %v2900_v12 = vadd.f32 %v2884_v4, %v2880_v58 }
 0x337   :  { %v2858_v13 = vrot.slane %v2857_v5, 4  ;;  %v2893_v15 = vadd.f32 %v2883_v6, %v2879_v61  ;;  %v2872_v16 = vrot.slane %v2871_v7, 4  ;;  %v2907_v17 = vadd.f32 %v2885_v8, %v2881_v62 }
 0x338   :  { %v2852_v18 = vadd.f32 %v2851_v9, %v2850_v1  ;;  %v2887_v19 = vrot.slane %v2886_v10, 4  ;;  %v2866_v20 = vadd.f32 %v2865_v11, %v2864_v3  ;;  %v2901_v21 = vrot.slane %v2900_v12, 4 }
 0x339   :  { %v2859_v22 = vadd.f32 %v2858_v13, %v2857_v5  ;;  %v2894_v23 = vrot.slane %v2893_v15, 4  ;;  %v2873_v24 = vadd.f32 %v2872_v16, %v2871_v7  ;;  %v2908_v25 = vrot.slane %v2907_v17, 4 }
 0x33a   :  { %v2853_v26 = vrot.slane %v2852_v18, 2  ;;  %v2888_v27 = vadd.f32 %v2887_v19, %v2886_v10  ;;  %v2867_v28 = vrot.slane %v2866_v20, 2  ;;  %v2902_v29 = vadd.f32 %v2901_v21, %v2900_v12 }
 0x33b   :  { %v2860_v30 = vrot.slane %v2859_v22, 2  ;;  %v2895_v31 = vadd.f32 %v2894_v23, %v2893_v15  ;;  %v2874_v14 = vrot.slane %v2873_v24, 2  ;;  %v2909_v32 = vadd.f32 %v2908_v25, %v2907_v17 }
 0x33c   :  { %v2854_v33 = vadd.f32 %v2853_v26, %v2852_v18  ;;  %v2889_v34 = vrot.slane %v2888_v27, 2  ;;  %v2868_v35 = vadd.f32 %v2867_v28, %v2866_v20  ;;  %v2903_v36 = vrot.slane %v2902_v29, 2 }
 0x33d   :  { %v2861_v37 = vadd.f32 %v2860_v30, %v2859_v22  ;;  %v2896_v38 = vrot.slane %v2895_v31, 2  ;;  %v2875_v39 = vadd.f32 %v2874_v14, %v2873_v24  ;;  %v2910_v40 = vrot.slane %v2909_v32, 2 }
 0x33e   :  { %v2855_v41 = vrot.slane %v2854_v33, 1  ;;  %v2890_v49 = vadd.f32 %v2889_v34, %v2888_v27  ;;  %v2869_v50 = vrot.slane %v2868_v35, 1  ;;  %v2904_v51 = vadd.f32 %v2903_v36, %v2902_v29 }
 0x33f   :  { %v2862_v52 = vrot.slane %v2861_v37, 1  ;;  %v2897_v55 = vadd.f32 %v2896_v38, %v2895_v31  ;;  %v2876_v56 = vrot.slane %v2875_v39, 1  ;;  %v2911_v57 = vadd.f32 %v2910_v40, %v2909_v32 }
 0x340   :  { %v2856_v58 = vadd.f32 %v2855_v41, %v2854_v33  ;;  %v2891_v61 = vrot.slane %v2890_v49, 1  ;;  %v2870_v62 = vadd.f32 %v2869_v50, %v2868_v35  ;;  %v2905_v1 = vrot.slane %v2904_v51, 1  ;;  %v2930_v50 = vld [vmem:[%s6563_s5] sm:$0xf] }
 0x341   :  { %v2863_v2 = vadd.f32 %v2862_v52, %v2861_v37  ;;  %v2898_v3 = vrot.slane %v2897_v55, 1  ;;  %v2877_v4 = vadd.f32 %v2876_v56, %v2875_v39  ;;  %v2912_v5 = vrot.slane %v2911_v57, 1 }
 0x342   :  { %v2892_v6 = vadd.f32 %v2891_v61, %v2890_v49  ;;  %v2914_v7 = vmul.f32 0.0625, %v2856_v58  ;;  %v2906_v8 = vadd.f32 %v2905_v1, %v2904_v51  ;;  %v2916_v9 = vmul.f32 0.0625, %v2870_v62 }
 0x343   :  { %v2899_v10 = vadd.f32 %v2898_v3, %v2897_v55  ;;  %v2915_v11 = vmul.f32 0.0625, %v2863_v2  ;;  %v2913_v12 = vadd.f32 %v2912_v5, %v2911_v57  ;;  %v2917_v13 = vmul.f32 0.0625, %v2877_v4 }
 0x344   :  { %v2918_v15 = vmul.f32 0.0625, %v2892_v6  ;;  %v2922_v16 = vmul.f32 %v2914_v7, %v2914_v7  ;;  %v2920_v17 = vmul.f32 0.0625, %v2906_v8  ;;  %v2924_v18 = vmul.f32 %v2916_v9, %v2916_v9 }
 0x345   :  { %v2919_v19 = vmul.f32 0.0625, %v2899_v10  ;;  %v2923_v20 = vmul.f32 %v2915_v11, %v2915_v11  ;;  %v2921_v21 = vmul.f32 0.0625, %v2913_v12  ;;  %v2925_v22 = vmul.f32 %v2917_v13, %v2917_v13 }
 0x346   :  { %v2926_v23 = vsub.f32 %v2918_v15, %v2922_v16  ;;  %v2928_v24 = vsub.f32 %v2920_v17, %v2924_v18  ;;  %v6218_v31 = vmov 1966171168  }
 0x347   :  { %v2927_v25 = vsub.f32 %v2919_v19, %v2923_v20  ;;  %v2929_v26 = vsub.f32 %v2921_v21, %v2925_v22  ;;  %v2946_v14 = vunpack.c.l.s4 %v6218_v31  ;;  %v5920_v31 = vld [vmem:[#allocation8 + $0x220] ss:$16 sps:$4 sm:$0xff]  }
 0x348   :  { %v2931_v27 = vadd.f32 1e-05, %v2926_v23  ;;  %v2933_v28 = vadd.f32 1e-05, %v2928_v24  ;;  %v5914_v24 = vld [vmem:[#allocation8 + $0x200] ss:$16 sps:$4 sm:$0xff]  }
 0x349   :  { %v2932_v29 = vadd.f32 1e-05, %v2927_v25  ;;  %v2934_v30 = vadd.f32 1e-05, %v2929_v26  ;;  %v2947_v32 = vunpack.c.0.s8 %v2946_v14  ;;  %v5917_v25 = vld [vmem:[#allocation8 + $0x208] ss:$16 sps:$4 sm:$0xff]  }
 0x34a   :  { %6042 = vrsqrt.f32 %v2931_v27  ;;  %v5923_v14 = vld [vmem:[#allocation8 + $0x228] ss:$16 sps:$4 sm:$0xff]  }
 0x34b   :  { %6044 = vrsqrt.f32 %v2933_v28  ;;  %v6434_v35 = vsub.s32 %v2947_v32, %v6361_v43  ;;  %v5928_v32 = vld [vmem:[#allocation8 + $0x244] ss:$16 sps:$4 sm:$0xff]  }
 0x34c   :  { %6046 = vrsqrt.f32 %v2932_v29  ;;  %v5922_v29 = vld [vmem:[#allocation8 + $0x224] ss:$16 sps:$4 sm:$0xff]  }
 0x34d   :  { %6048 = vrsqrt.f32 %v2934_v30  ;;  %v5925_v30 = vld [vmem:[#allocation8 + $0x22c] ss:$16 sps:$4 sm:$0xff]  }
 0x354   :  { %v6043_v33 = vpop.eup %6042 }
 0x355   :  { %v6045_v34 = vpop.eup %6044 }
 0x356   :  { %v6047_v36 = vpop.eup %6046 }
 0x357   :  { %v6049_v37 = vpop.eup %6048  ;;  %v2943_v38 = vcombine.low %v6043_v33, %v6047_v36  ;;  %v5931_v33 = vld [vmem:[#allocation8 + $0x24c] ss:$16 sps:$4 sm:$0xff]   ;;  %v5929_v36 = vld [vmem:[#allocation8 + $0x248] ss:$16 sps:$4 sm:$0xff]  }
 0x358   :  { %v2944_v39 = vcombine.low %v6045_v34, %v6049_v37  ;;  %v5926_v34 = vld [vmem:[#allocation8 + $0x240] ss:$16 sps:$4 sm:$0xff]   ;;  %v5934_v37 = vld [vmem:[#allocation8 + $0x264] ss:$16 sps:$4 sm:$0xff]  }
 0x359   :  { %v2951_v40 = vrot.slane %v2943_v38, %v6434_v35  ;;  %v5937_v38 = vld [vmem:[#allocation8 + $0x26c] ss:$16 sps:$4 sm:$0xff]  }
 0x35a   :  { %v2958_v41 = vrot.slane %v2944_v39, %v6434_v35  ;;  %v5932_v39 = vld [vmem:[#allocation8 + $0x260] ss:$16 sps:$4 sm:$0xff]  }
 0x35c   :  { %v2959_v49 = vcombine.low %v2951_v40, %v2958_v41  ;;  %v5935_v40 = vld [vmem:[#allocation8 + $0x268] ss:$16 sps:$4 sm:$0xff]   ;;  %v5940_v41 = vld [vmem:[#allocation8 + $0x284] ss:$16 sps:$4 sm:$0xff]  }
 0x35e   :  { %v2966_v51 = vrot.slane %v2959_v49, %v6434_v35  ;;  %v5943_v49 = vld [vmem:[#allocation8 + $0x28c] ss:$16 sps:$4 sm:$0xff]  }
 0x360   :  { %v2968_v52 = vmul.f32 %v2966_v51, %v2930_v50  ;;  %v5938_v50 = vld [vmem:[#allocation8 + $0x280] ss:$16 sps:$4 sm:$0xff]   ;;  %v5941_v51 = vld [vmem:[#allocation8 + $0x288] ss:$16 sps:$4 sm:$0xff]  }
 0x362   :  { %v2982_v55 = vrot.slane %v2968_v52, %v6367_v45  ;;  %v2986_v43 = vrot.slane %v2968_v52, %v6376_v48  ;;  %v2974_v56 = vrot.slane %v2968_v52, %v6364_v44  ;;  %v2978_v57 = vrot.slane %v2968_v52, %v6373_v47  ;;  %v5946_v52 = vld [vmem:[#allocation8 + $0x2a4] ss:$16 sps:$4 sm:$0xff]  }
 0x364   :  { %v2993_v58 = vmul.f32 %v2982_v55, %v2916_v9  ;;  %v2994_v61 = vmul.f32 %v2986_v43, %v2917_v13  ;;  %v3032_v62 = vmul.f32 %v2986_v43, %v6415_v0  ;;  %v2991_v1 = vmul.f32 %v2974_v56, %v2914_v7 }
 0x365   :  { %v2992_v2 = vmul.f32 %v2978_v57, %v2915_v11  ;;  %v3026_v3 = vmul.f32 %v2978_v57, %v6397_v53  ;;  %v3030_v4 = vmul.f32 %v2978_v57, %v6413_v63  ;;  %v3025_v5 = vmul.f32 %v2974_v56, %v6393_v42  ;;  %v2969_v53 = vld [vmem:[%s6564_s6] sm:$0xf]  ;;  %v5952_v57 = vld [vmem:[#allocation8 + $0x2c4] ss:$16 sps:$4 sm:$0xff]  }
 0x366   :  { %v3000_v6 = vcombine.low %v2993_v58, %v2994_v61  ;;  %v3029_v8 = vmul.f32 %v2974_v56, %v6405_v59  ;;  %v3028_v10 = vmul.f32 %v2986_v43, %v6399_v54  ;;  %v3027_v12 = vmul.f32 %v2982_v55, %v6395_v46  ;;  %v5944_v43 = vld [vmem:[#allocation8 + $0x2a0] ss:$16 sps:$4 sm:$0xff]   ;;  %v5947_v56 = vld [vmem:[#allocation8 + $0x2a8] ss:$16 sps:$4 sm:$0xff]   ;;  %v5955_v58 = vld [vmem:[#allocation8 + $0x2cc] ss:$16 sps:$4 sm:$0xff]  }
 0x367   :  { %v2999_v15 = vcombine.low %v2991_v1, %v2992_v2  ;;  %v3031_v9 = vmul.f32 %v2982_v55, %v6407_v60  ;;  %v5949_v55 = vld [vmem:[#allocation8 + $0x2ac] ss:$16 sps:$4 sm:$0xff]   ;;  %v5950_v61 = vld [vmem:[#allocation8 + $0x2c0] ss:$16 sps:$4 sm:$0xff]   ;;  %v5958_v1 = vld [vmem:[#allocation8 + $0x2e4] ss:$16 sps:$4 sm:$0xff]  }
 0x368   :  { %v3014_v0 = vrot.slane %v3000_v6, %v6434_v35  ;;  %v5961_v2 = vld [vmem:[#allocation8 + $0x2ec] ss:$16 sps:$4 sm:$0xff]  }
 0x369   :  { %v3007_v7 = vrot.slane %v2999_v15, %v6434_v35  ;;  %v5967_v6 = vld [vmem:[#allocation8 + $0x30c] ss:$16 sps:$4 sm:$0xff]  }
 0x36a   :  { %v5973_v15 = vld [vmem:[#allocation8 + $0x32c] ss:$16 sps:$4 sm:$0xff]  }
 0x36b   :  { %v3015_v11 = vcombine.low %v3007_v7, %v3014_v0  ;;  %v5971_v0 = vld [vmem:[#allocation8 + $0x328] ss:$16 sps:$4 sm:$0xff]   ;;  %v5976_v7 = vld [vmem:[#allocation8 + $0x344] ss:$16 sps:$4 sm:$0xff]  }
 0x36d   :  { %v3022_v42 = vrot.slane %v3015_v11, %v6434_v35  ;;  %v5979_v11 = vld [vmem:[#allocation8 + $0x34c] ss:$16 sps:$4 sm:$0xff]  }
 0x36f   :  { %v3024_v63 = vsub.f32 %v2969_v53, %v3022_v42  ;;  %v5974_v53 = vld [vmem:[#allocation8 + $0x340] ss:$16 sps:$4 sm:$0xff]   ;;  %v5977_v42 = vld [vmem:[#allocation8 + $0x348] ss:$16 sps:$4 sm:$0xff]  }
 0x371   :  { %v3041_v59 = vrot.slane %v3024_v63, %v6373_v47  ;;  %v3037_v54 = vrot.slane %v3024_v63, %v6364_v44  ;;  %v3049_v46 = vrot.slane %v3024_v63, %v6376_v48  ;;  %v3045_v60 = vrot.slane %v3024_v63, %v6367_v45  ;;  %v5982_v63 = vld [vmem:[#allocation8 + $0x364] ss:$16 sps:$4 sm:$0xff]  }
 0x373   :  { %v3055_v13 = vadd.f32 %v3041_v59, %v3026_v3  ;;  %v3059_v16 = vadd.f32 %v3041_v59, %v3030_v4  ;;  %v3054_v17 = vadd.f32 %v3037_v54, %v3025_v5  ;;  %v3058_v18 = vadd.f32 %v3037_v54, %v3029_v8  ;;  %v5956_v3 = vld [vmem:[#allocation8 + $0x2e0] ss:$16 sps:$4 sm:$0xff]   ;;  %v5959_v4 = vld [vmem:[#allocation8 + $0x2e8] ss:$16 sps:$4 sm:$0xff]   ;;  %v5964_v5 = vld [vmem:[#allocation8 + $0x304] ss:$16 sps:$4 sm:$0xff]  }
 0x374   :  { %v3057_v19 = vadd.f32 %v3049_v46, %v3028_v10  ;;  %v3061_v20 = vadd.f32 %v3049_v46, %v3032_v62  ;;  %v3056_v21 = vadd.f32 %v3045_v60, %v3027_v12  ;;  %v3060_v22 = vadd.f32 %v3045_v60, %v3031_v9  ;;  %v5953_v62 = vld [vmem:[#allocation8 + $0x2c8] ss:$16 sps:$4 sm:$0xff]   ;;  %v5962_v8 = vld [vmem:[#allocation8 + $0x300] ss:$16 sps:$4 sm:$0xff]   ;;  %v5970_v12 = vld [vmem:[#allocation8 + $0x324] ss:$16 sps:$4 sm:$0xff]  }
 0x375   :  { %v3063_v23 = vpack.c.bf16 %v3059_v16, %v3055_v13  ;;  %v3062_v26 = vpack.c.bf16 %v3058_v18, %v3054_v17  ;;  %v5965_v10 = vld [vmem:[#allocation8 + $0x308] ss:$16 sps:$4 sm:$0xff]   ;;  %v5968_v9 = vld [vmem:[#allocation8 + $0x320] ss:$16 sps:$4 sm:$0xff]   ;;  %v5985_v59 = vld [vmem:[#allocation8 + $0x36c] ss:$16 sps:$4 sm:$0xff]  }
 0x376   :  { %v3065_v27 = vpack.c.bf16 %v3061_v20, %v3057_v19  ;;  %v6464_v28 = vpack.c.bf16 %v3060_v22, %v3056_v21  ;;  %v5980_v54 = vld [vmem:[#allocation8 + $0x360] ss:$16 sps:$4 sm:$0xff]   ;;  %v5983_v46 = vld [vmem:[#allocation8 + $0x368] ss:$16 sps:$4 sm:$0xff]   ;;  %v5988_v60 = vld [vmem:[#allocation8 + $0x384] ss:$16 sps:$4 sm:$0xff]  }
 0x377   :  { %3888 = vmatprep.mubr.bf16.mxu0 %v3063_v23  ;;  %3974 = vmatprep.mubr.bf16.mxu1 %v3063_v23  ;;  %v5991_v13 = vld [vmem:[#allocation8 + $0x38c] ss:$16 sps:$4 sm:$0xff]   ;;  %v5986_v16 = vld [vmem:[#allocation8 + $0x380] ss:$16 sps:$4 sm:$0xff]   ;;  %v5989_v17 = vld [vmem:[#allocation8 + $0x388] ss:$16 sps:$4 sm:$0xff]  }
 0x378   :  { %3889 = vmatmul.mubr.bf16.vlgmr.msra.gmra.mrb[8].mxu0 %v3062_v26  ;;  %3975 = vmatmul.mubr.bf16.vlgmr.msra.gmra.mrb[8].mxu1 %v3062_v26  ;;  %v5994_v18 = vld [vmem:[#allocation8 + $0x3a4] ss:$16 sps:$4 sm:$0xff]   ;;  %v5997_v19 = vld [vmem:[#allocation8 + $0x3ac] ss:$16 sps:$4 sm:$0xff]   ;;  %v5992_v20 = vld [vmem:[#allocation8 + $0x3a0] ss:$16 sps:$4 sm:$0xff]  }
 0x379   :  { %3900 = vmatpush1.bf16.msra.mxu0 %v5914_v24  ;;  %3986 = vmatpush1.bf16.msra.mxu1 %v5917_v25  ;;  %v5995_v21 = vld [vmem:[#allocation8 + $0x3a8] ss:$16 sps:$4 sm:$0xff]   ;;  %v6000_v22 = vld [vmem:[#allocation8 + $0x3c4] ss:$16 sps:$4 sm:$0xff]   ;;  %v6003_v23 = vld [vmem:[#allocation8 + $0x3cc] ss:$16 sps:$4 sm:$0xff]  }
 0x37a   :  { %3931 = vmatprep.mubr.bf16.mxu0 %v3065_v27  ;;  %4017 = vmatprep.mubr.bf16.mxu1 %v3065_v27  ;;  %v5998_v24 = vld [vmem:[#allocation8 + $0x3c0] ss:$16 sps:$4 sm:$0xff]   ;;  %v6001_v25 = vld [vmem:[#allocation8 + $0x3c8] ss:$16 sps:$4 sm:$0xff]   ;;  %v6006_v26 = vld [vmem:[#allocation8 + $0x3e4] ss:$16 sps:$4 sm:$0xff]  }
 0x37b   :  { %3901 = vmatprep.subr.bf16.mxu0 %v5922_v29  ;;  %3987 = vmatprep.subr.bf16.mxu1 %v5925_v30  ;;  %v6009_v27 = vld [vmem:[#allocation8 + $0x3ec] ss:$16 sps:$4 sm:$0xff]   ;;  %v6004_v29 = vld [vmem:[#allocation8 + $0x3e0] ss:$16 sps:$4 sm:$0xff]   ;;  %v6007_v30 = vld [vmem:[#allocation8 + $0x3e8] ss:$16 sps:$4 sm:$0xff]  }
 0x37d   :  { %3902 = vmatpush1.bf16.msra.mxu0 %v5920_v31  ;;  %3988 = vmatpush1.bf16.msra.mxu1 %v5923_v14  ;;  %v6010_v31 = vld [vmem:[#allocation10 + $0x40] sm:$0xff]  }
 0x37e   :  { %3903 = vmatprep.subr.bf16.mxu0 %v5928_v32  ;;  %3989 = vmatprep.subr.bf16.mxu1 %v5931_v33  ;;  %v6011_v14 = vld [vmem:[#allocation10 + $0xc0] sm:$0xff]  }
 0x37f   :  { %v6012_v32 = vld [vmem:[#allocation10] sm:$0xff]  }
 0x380   :  { %v6013_v33 = vld [vmem:[#allocation10 + $0x80] sm:$0xff]  }
 0x381   :  { %3904 = vmatpush1.bf16.msra.mxu0 %v5926_v34  ;;  %3990 = vmatpush1.bf16.msra.mxu1 %v5929_v36  ;;  %v6014_v34 = vld [vmem:[#allocation10 + $0x48] sm:$0xff]  }
 0x382   :  { %3905 = vmatprep.subr.bf16.mxu0 %v5934_v37  ;;  %3991 = vmatprep.subr.bf16.mxu1 %v5937_v38  ;;  %v6015_v36 = vld [vmem:[#allocation10 + $0xc8] sm:$0xff]  }
 0x383   :  { %v6016_v37 = vld [vmem:[#allocation10 + $0x8] sm:$0xff]  }
 0x384   :  { %v6017_v38 = vld [vmem:[#allocation10 + $0x88] sm:$0xff]  }
 0x385   :  { %3906 = vmatpush1.bf16.msra.mxu0 %v5932_v39  ;;  %3992 = vmatpush1.bf16.msra.mxu1 %v5935_v40  ;;  %v6018_v39 = vld [vmem:[#allocation10 + $0x50] sm:$0xff]  }
 0x386   :  { %3907 = vmatprep.subr.bf16.mxu0 %v5940_v41  ;;  %3993 = vmatprep.subr.bf16.mxu1 %v5943_v49  ;;  %v6019_v40 = vld [vmem:[#allocation10 + $0xd0] sm:$0xff]   ;;  %v6022_v49 = vld [vmem:[#allocation10 + $0x58] sm:$0xff]  }
 0x387   :  { %v6020_v41 = vld [vmem:[#allocation10 + $0x10] sm:$0xff]  }
 0x389   :  { %3908 = vmatpush1.bf16.msra.mxu0 %v5938_v50  ;;  %3994 = vmatpush1.bf16.msra.mxu1 %v5941_v51  ;;  %v6023_v50 = vld [vmem:[#allocation10 + $0xd8] sm:$0xff]  }
 0x38a   :  { %3909 = vmatprep.subr.bf16.mxu0 %v5946_v52  ;;  %3995 = vmatprep.subr.bf16.mxu1 %v5949_v55  ;;  %v6024_v51 = vld [vmem:[#allocation10 + $0x18] sm:$0xff]   ;;  %v6026_v55 = vld [vmem:[#allocation10 + $0x60] sm:$0xff]  }
 0x38b   :  { %v6025_v52 = vld [vmem:[#allocation10 + $0x98] sm:$0xff]  }
 0x38d   :  { %3910 = vmatpush1.bf16.msra.mxu0 %v5944_v43  ;;  %3996 = vmatpush1.bf16.msra.mxu1 %v5947_v56  ;;  %v6027_v43 = vld [vmem:[#allocation10 + $0xe0] sm:$0xff]  }
 0x38e   :  { %3911 = vmatprep.subr.bf16.mxu0 %v5952_v57  ;;  %3997 = vmatprep.subr.bf16.mxu1 %v5955_v58  ;;  %v6028_v56 = vld [vmem:[#allocation10 + $0x20] sm:$0xff]   ;;  %v6030_v58 = vld [vmem:[#allocation10 + $0x68] sm:$0xff]  }
 0x38f   :  { %v6029_v57 = vld [vmem:[#allocation10 + $0xa0] sm:$0xff]  }
 0x391   :  { %3912 = vmatpush1.bf16.msra.mxu0 %v5950_v61  ;;  %3998 = vmatpush1.bf16.msra.mxu1 %v5953_v62  ;;  %v6031_v61 = vld [vmem:[#allocation10 + $0xe8] sm:$0xff]  }
 0x392   :  { %3913 = vmatprep.subr.bf16.mxu0 %v5958_v1  ;;  %3999 = vmatprep.subr.bf16.mxu1 %v5961_v2  ;;  %v6032_v62 = vld [vmem:[#allocation10 + $0x28] sm:$0xff]   ;;  %v6034_v2 = vld [vmem:[#allocation10 + $0x70] sm:$0xff]  }
 0x393   :  { %v6033_v1 = vld [vmem:[#allocation10 + $0xa8] sm:$0xff]  }
 0x395   :  { %3914 = vmatpush1.bf16.msra.mxu0 %v5956_v3  ;;  %4000 = vmatpush1.bf16.msra.mxu1 %v5959_v4  ;;  %v6035_v3 = vld [vmem:[#allocation10 + $0xf0] sm:$0xff]  }
 0x396   :  { %3915 = vmatprep.subr.bf16.mxu0 %v5964_v5  ;;  %4001 = vmatprep.subr.bf16.mxu1 %v5967_v6  ;;  %v6036_v4 = vld [vmem:[#allocation10 + $0x30] sm:$0xff]   ;;  %v6038_v6 = vld [vmem:[#allocation10 + $0x78] sm:$0xff]  }
 0x397   :  { %v6037_v5 = vld [vmem:[#allocation10 + $0xb0] sm:$0xff]  }
 0x399   :  { %3916 = vmatpush1.bf16.msra.mxu0 %v5962_v8  ;;  %4002 = vmatpush1.bf16.msra.mxu1 %v5965_v10  ;;  %v6039_v8 = vld [vmem:[#allocation10 + $0xf8] sm:$0xff]  }
 0x39a   :  { %3917 = vmatprep.subr.bf16.mxu0 %v5970_v12  ;;  %4003 = vmatprep.subr.bf16.mxu1 %v5973_v15  ;;  %v6040_v10 = vld [vmem:[#allocation10 + $0x38] sm:$0xff]   ;;  %v3194_v15 = vld [vmem:[%s6566_s8] sm:$0xf] }
 0x39b   :  { %v6041_v12 = vld [vmem:[#allocation10 + $0xb8] sm:$0xff]  }
 0x39d   :  { %3918 = vmatpush1.bf16.msra.mxu0 %v5968_v9  ;;  %4004 = vmatpush1.bf16.msra.mxu1 %v5971_v0  ;;  %v3199_v9 = vrot.slane %v3194_v15, %v6364_v44  ;;  %v3207_v0 = vrot.slane %v3194_v15, %v6367_v45 }
 0x39e   :  { %3919 = vmatprep.subr.bf16.mxu0 %v5976_v7  ;;  %4005 = vmatprep.subr.bf16.mxu1 %v5979_v11  ;;  %v3203_v7 = vrot.slane %v3194_v15, %v6373_v47  ;;  %v3211_v11 = vrot.slane %v3194_v15, %v6376_v48 }
 0x3a1   :  { %3920 = vmatpush1.bf16.msra.mxu0 %v5974_v53  ;;  %4006 = vmatpush1.bf16.msra.mxu1 %v5977_v42 }
 0x3a2   :  { %3921 = vmatprep.subr.bf16.mxu0 %v5982_v63  ;;  %4007 = vmatprep.subr.bf16.mxu1 %v5985_v59 }
 0x3a5   :  { %3922 = vmatpush1.bf16.msra.mxu0 %v5980_v54  ;;  %4008 = vmatpush1.bf16.msra.mxu1 %v5983_v46 }
 0x3a6   :  { %3923 = vmatprep.subr.bf16.mxu0 %v5988_v60  ;;  %4009 = vmatprep.subr.bf16.mxu1 %v5991_v13 }
 0x3a9   :  { %3924 = vmatpush1.bf16.msra.mxu0 %v5986_v16  ;;  %4010 = vmatpush1.bf16.msra.mxu1 %v5989_v17 }
 0x3aa   :  { %3925 = vmatprep.subr.bf16.mxu0 %v5994_v18  ;;  %4011 = vmatprep.subr.bf16.mxu1 %v5997_v19 }
 0x3ad   :  { %3926 = vmatpush1.bf16.msra.mxu0 %v5992_v20  ;;  %4012 = vmatpush1.bf16.msra.mxu1 %v5995_v21 }
 0x3ae   :  { %3927 = vmatprep.subr.bf16.mxu0 %v6000_v22  ;;  %4013 = vmatprep.subr.bf16.mxu1 %v6003_v23 }
 0x3b1   :  { %3928 = vmatpush1.bf16.msra.mxu0 %v5998_v24  ;;  %4014 = vmatpush1.bf16.msra.mxu1 %v6001_v25 }
 0x3b2   :  { %3929 = vmatprep.subr.bf16.mxu0 %v6006_v26  ;;  %4015 = vmatprep.subr.bf16.mxu1 %v6009_v27 }
 0x3b5   :  { %3930 = vmatpush1.bf16.msra.mxu0 %v6004_v29  ;;  %4016 = vmatpush1.bf16.msra.mxu1 %v6007_v30 }
 0x3b6   :  { %5156 = vmatprep.subr.bf16.mxu0 %v6010_v31  ;;  %5178 = vmatprep.subr.bf16.mxu1 %v6011_v14 }
 0x3b8   :  { %3932 = vmatmul.mubr.bf16.vlgmr.msra.gmra.mrb[8].mxu0 %v6464_v28  ;;  %4018 = vmatmul.mubr.bf16.vlgmr.msra.gmra.mrb[8].mxu1 %v6464_v28  ;;  %v6021_v28 = vld [vmem:[#allocation10 + $0x90] sm:$0xff]  }
 0x3b9   :  { %5157 = vmatpush3.bf16.msra.mxu0 %v6012_v32  ;;  %5179 = vmatpush3.bf16.msra.mxu1 %v6013_v33 }
 0x3ba   :  { %5158 = vmatprep.subr.bf16.mxu0 %v6014_v34  ;;  %5180 = vmatprep.subr.bf16.mxu1 %v6015_v36 }
 0x3bd   :  { %5159 = vmatpush3.bf16.msra.mxu0 %v6016_v37  ;;  %5181 = vmatpush3.bf16.msra.mxu1 %v6017_v38 }
 0x3be   :  { %5160 = vmatprep.subr.bf16.mxu0 %v6018_v39  ;;  %5182 = vmatprep.subr.bf16.mxu1 %v6019_v40 }
 0x3c1   :  { %5161 = vmatpush3.bf16.msra.mxu0 %v6020_v41  ;;  %5183 = vmatpush3.bf16.msra.mxu1 %v6021_v28 }
 0x3c2   :  { %5162 = vmatprep.subr.bf16.mxu0 %v6022_v49  ;;  %5184 = vmatprep.subr.bf16.mxu1 %v6023_v50 }
 0x3c5   :  { %5163 = vmatpush3.bf16.msra.mxu0 %v6024_v51  ;;  %5185 = vmatpush3.bf16.msra.mxu1 %v6025_v52 }
 0x3c6   :  { %5164 = vmatprep.subr.bf16.mxu0 %v6026_v55  ;;  %5186 = vmatprep.subr.bf16.mxu1 %v6027_v43 }
 0x3c9   :  { %5165 = vmatpush3.bf16.msra.mxu0 %v6028_v56  ;;  %5187 = vmatpush3.bf16.msra.mxu1 %v6029_v57 }
 0x3ca   :  { %5166 = vmatprep.subr.bf16.mxu0 %v6030_v58  ;;  %5188 = vmatprep.subr.bf16.mxu1 %v6031_v61 }
 0x3cd   :  { %5167 = vmatpush3.bf16.msra.mxu0 %v6032_v62  ;;  %5189 = vmatpush3.bf16.msra.mxu1 %v6033_v1 }
 0x3ce   :  { %5168 = vmatprep.subr.bf16.mxu0 %v6034_v2  ;;  %5190 = vmatprep.subr.bf16.mxu1 %v6035_v3 }
 0x3d1   :  { %5169 = vmatpush3.bf16.msra.mxu0 %v6036_v4  ;;  %5191 = vmatpush3.bf16.msra.mxu1 %v6037_v5 }
 0x3d2   :  { %5170 = vmatprep.subr.bf16.mxu0 %v6038_v6  ;;  %5192 = vmatprep.subr.bf16.mxu1 %v6039_v8 }
 0x3d5   :  { %5171 = vmatpush3.bf16.msra.mxu0 %v6040_v10  ;;  %5193 = vmatpush3.bf16.msra.mxu1 %v6041_v12 }
 0x48b   :  { %v3933_v53 = vpop.f32.mrb[8].mxu0  ;;  %v4019_v42 = vpop.f32.mrb[8].mxu1 }
 0x48c   :  { %v5216_v63 = vadd.f32 %v3933_v53, %v3199_v9  ;;  %v5220_v59 = vadd.f32 %v4019_v42, %v3207_v0  ;;  %v3935_v54 = vpop.f32.mrb[9].mxu0  ;;  %v4021_v46 = vpop.f32.mrb[9].mxu1 }
 0x48d   :  { %v5217_v60 = vadd.f32 %v3935_v54, %v3203_v7  ;;  %v5221_v13 = vadd.f32 %v4021_v46, %v3211_v11  ;;  %v3937_v16 = vpop.f32.mrb[10].mxu0  ;;  %v4023_v17 = vpop.f32.mrb[10].mxu1 }
 0x48e   :  { %v6475_v18 = vmax.f32 %v5216_v63, 0.0  ;;  %v6477_v19 = vmax.f32 %v5220_v59, 0.0  ;;  %v5218_v20 = vadd.f32 %v3937_v16, %v3199_v9  ;;  %v5222_v21 = vadd.f32 %v4023_v17, %v3207_v0  ;;  %v3939_v22 = vpop.f32.mrb[11].mxu0  ;;  %v4025_v23 = vpop.f32.mrb[11].mxu1 }
 0x48f   :  { %v6479_v24 = vmax.f32 %v5217_v60, 0.0  ;;  %v6481_v25 = vmax.f32 %v5221_v13, 0.0  ;;  %v5219_v26 = vadd.f32 %v3939_v22, %v3203_v7  ;;  %v5223_v27 = vadd.f32 %v4025_v23, %v3211_v11 }
 0x490   :  { %v4064_v29 = vmul.f32 %v6475_v18, %v6475_v18  ;;  %v4066_v30 = vmul.f32 %v6477_v19, %v6477_v19  ;;  %v6487_v31 = vmax.f32 %v5218_v20, 0.0  ;;  %v6489_v14 = vmax.f32 %v5222_v21, 0.0 }
 0x491   :  { %v4065_v32 = vmul.f32 %v6479_v24, %v6479_v24  ;;  %v4067_v33 = vmul.f32 %v6481_v25, %v6481_v25  ;;  %v6495_v34 = vmax.f32 %v5219_v26, 0.0  ;;  %v6497_v36 = vmax.f32 %v5223_v27, 0.0 }
 0x492   :  { %v4036_v37 = vadd.f32 %v6487_v31, %v6475_v18  ;;  %v4068_v38 = vmul.f32 %v6487_v31, %v6487_v31  ;;  %v4050_v39 = vadd.f32 %v6489_v14, %v6477_v19  ;;  %v4070_v40 = vmul.f32 %v6489_v14, %v6489_v14 }
 0x493   :  { %v4043_v41 = vadd.f32 %v6495_v34, %v6479_v24  ;;  %v4069_v28 = vmul.f32 %v6495_v34, %v6495_v34  ;;  %v4057_v49 = vadd.f32 %v6497_v36, %v6481_v25  ;;  %v4071_v50 = vmul.f32 %v6497_v36, %v6497_v36 }
 0x494   :  { %v4037_v51 = vrot.slane %v4036_v37, 4  ;;  %v4072_v52 = vadd.f32 %v4068_v38, %v4064_v29  ;;  %v4051_v55 = vrot.slane %v4050_v39, 4  ;;  %v4086_v43 = vadd.f32 %v4070_v40, %v4066_v30 }
 0x495   :  { %v4044_v56 = vrot.slane %v4043_v41, 4  ;;  %v4079_v57 = vadd.f32 %v4069_v28, %v4065_v32  ;;  %v4058_v58 = vrot.slane %v4057_v49, 4  ;;  %v4093_v61 = vadd.f32 %v4071_v50, %v4067_v33 }
 0x496   :  { %v4038_v62 = vadd.f32 %v4037_v51, %v4036_v37  ;;  %v4073_v1 = vrot.slane %v4072_v52, 4  ;;  %v4052_v2 = vadd.f32 %v4051_v55, %v4050_v39  ;;  %v4087_v3 = vrot.slane %v4086_v43, 4 }
 0x497   :  { %v4045_v4 = vadd.f32 %v4044_v56, %v4043_v41  ;;  %v4080_v5 = vrot.slane %v4079_v57, 4  ;;  %v4059_v6 = vadd.f32 %v4058_v58, %v4057_v49  ;;  %v4094_v8 = vrot.slane %v4093_v61, 4 }
 0x498   :  { %v4039_v10 = vrot.slane %v4038_v62, 2  ;;  %v4074_v12 = vadd.f32 %v4073_v1, %v4072_v52  ;;  %v4053_v15 = vrot.slane %v4052_v2, 2  ;;  %v4088_v9 = vadd.f32 %v4087_v3, %v4086_v43 }
 0x499   :  { %v4046_v0 = vrot.slane %v4045_v4, 2  ;;  %v4081_v7 = vadd.f32 %v4080_v5, %v4079_v57  ;;  %v4060_v11 = vrot.slane %v4059_v6, 2  ;;  %v4095_v53 = vadd.f32 %v4094_v8, %v4093_v61 }
 0x49a   :  { %v4040_v42 = vadd.f32 %v4039_v10, %v4038_v62  ;;  %v4075_v63 = vrot.slane %v4074_v12, 2  ;;  %v4054_v59 = vadd.f32 %v4053_v15, %v4052_v2  ;;  %v4089_v54 = vrot.slane %v4088_v9, 2 }
 0x49b   :  { %v4047_v46 = vadd.f32 %v4046_v0, %v4045_v4  ;;  %v4082_v60 = vrot.slane %v4081_v7, 2  ;;  %v4061_v13 = vadd.f32 %v4060_v11, %v4059_v6  ;;  %v4096_v16 = vrot.slane %v4095_v53, 2 }
 0x49c   :  { %v4041_v17 = vrot.slane %v4040_v42, 1  ;;  %v4076_v20 = vadd.f32 %v4075_v63, %v4074_v12  ;;  %v4055_v21 = vrot.slane %v4054_v59, 1  ;;  %v4090_v22 = vadd.f32 %v4089_v54, %v4088_v9 }
 0x49d   :  { %v4048_v23 = vrot.slane %v4047_v46, 1  ;;  %v4083_v26 = vadd.f32 %v4082_v60, %v4081_v7  ;;  %v4062_v27 = vrot.slane %v4061_v13, 1  ;;  %v4097_v29 = vadd.f32 %v4096_v16, %v4095_v53 }
 0x49e   :  { %v4042_v30 = vadd.f32 %v4041_v17, %v4040_v42  ;;  %v4077_v32 = vrot.slane %v4076_v20, 1  ;;  %v4056_v33 = vadd.f32 %v4055_v21, %v4054_v59  ;;  %v4091_v37 = vrot.slane %v4090_v22, 1 }
 0x49f   :  { %v4049_v38 = vadd.f32 %v4048_v23, %v4047_v46  ;;  %v4084_v39 = vrot.slane %v4083_v26, 1  ;;  %v4063_v40 = vadd.f32 %v4062_v27, %v4061_v13  ;;  %v4098_v41 = vrot.slane %v4097_v29, 1  ;;  %v4116_v13 = vld [vmem:[%s6567_s9] sm:$0xf] }
 0x4a0   :  { %v4078_v28 = vadd.f32 %v4077_v32, %v4076_v20  ;;  %v4100_v49 = vmul.f32 0.0625, %v4042_v30  ;;  %v4092_v50 = vadd.f32 %v4091_v37, %v4090_v22  ;;  %v4102_v51 = vmul.f32 0.0625, %v4056_v33 }
 0x4a1   :  { %v4085_v52 = vadd.f32 %v4084_v39, %v4083_v26  ;;  %v4101_v55 = vmul.f32 0.0625, %v4049_v38  ;;  %v4099_v43 = vadd.f32 %v4098_v41, %v4097_v29  ;;  %v4103_v56 = vmul.f32 0.0625, %v4063_v40 }
 0x4a2   :  { %v4104_v57 = vmul.f32 0.0625, %v4078_v28  ;;  %v4108_v58 = vmul.f32 %v4100_v49, %v4100_v49  ;;  %v4106_v61 = vmul.f32 0.0625, %v4092_v50  ;;  %v4110_v62 = vmul.f32 %v4102_v51, %v4102_v51 }
 0x4a3   :  { %v4105_v1 = vmul.f32 0.0625, %v4085_v52  ;;  %v4109_v2 = vmul.f32 %v4101_v55, %v4101_v55  ;;  %v4107_v3 = vmul.f32 0.0625, %v4099_v43  ;;  %v4111_v4 = vmul.f32 %v4103_v56, %v4103_v56 }
 0x4a4   :  { %v4112_v5 = vsub.f32 %v4104_v57, %v4108_v58  ;;  %v4114_v6 = vsub.f32 %v4106_v61, %v4110_v62 }
 0x4a5   :  { %v4113_v8 = vsub.f32 %v4105_v1, %v4109_v2  ;;  %v4115_v10 = vsub.f32 %v4107_v3, %v4111_v4 }
 0x4a6   :  { %v4117_v12 = vadd.f32 1e-05, %v4112_v5  ;;  %v4119_v15 = vadd.f32 1e-05, %v4114_v6 }
 0x4a7   :  { %v4118_v9 = vadd.f32 1e-05, %v4113_v8  ;;  %v4120_v0 = vadd.f32 1e-05, %v4115_v10 }
 0x4a8   :  { %6050 = vrsqrt.f32 %v4117_v12 }
 0x4a9   :  { %6052 = vrsqrt.f32 %v4119_v15 }
 0x4aa   :  { %6054 = vrsqrt.f32 %v4118_v9 }
 0x4ab   :  { %6056 = vrsqrt.f32 %v4120_v0 }
 0x4b2   :  { %v6051_v7 = vpop.eup %6050 }
 0x4b3   :  { %v6053_v11 = vpop.eup %6052 }
 0x4b4   :  { %v6055_v53 = vpop.eup %6054 }
 0x4b5   :  { %v6057_v42 = vpop.eup %6056  ;;  %v4129_v63 = vcombine.low %v6051_v7, %v6055_v53 }
 0x4b6   :  { %v4130_v59 = vcombine.low %v6053_v11, %v6057_v42 }
 0x4b7   :  { %v4137_v54 = vrot.slane %v4129_v63, %v6434_v35 }
 0x4b8   :  { %v4144_v46 = vrot.slane %v4130_v59, %v6434_v35 }
 0x4ba   :  { %v4145_v60 = vcombine.low %v4137_v54, %v4144_v46 }
 0x4bc   :  { %v4152_v16 = vrot.slane %v4145_v60, %v6434_v35 }
 0x4be   :  { %v4154_v17 = vmul.f32 %v4152_v16, %v4116_v13 }
 0x4c0   :  { %v4168_v20 = vrot.slane %v4154_v17, %v6367_v45  ;;  %v4172_v21 = vrot.slane %v4154_v17, %v6376_v48  ;;  %v4160_v22 = vrot.slane %v4154_v17, %v6364_v44  ;;  %v4164_v23 = vrot.slane %v4154_v17, %v6373_v47 }
 0x4c2   :  { %v4179_v26 = vmul.f32 %v4168_v20, %v4102_v51  ;;  %v4180_v27 = vmul.f32 %v4172_v21, %v4103_v56  ;;  %v4218_v29 = vmul.f32 %v4172_v21, %v6497_v36  ;;  %v4177_v30 = vmul.f32 %v4160_v22, %v4100_v49 }
 0x4c3   :  { %v4178_v32 = vmul.f32 %v4164_v23, %v4101_v55  ;;  %v4212_v33 = vmul.f32 %v4164_v23, %v6479_v24  ;;  %v4216_v37 = vmul.f32 %v4164_v23, %v6495_v34  ;;  %v4214_v38 = vmul.f32 %v4172_v21, %v6481_v25  ;;  %v4155_v24 = vld [vmem:[%s6568_s10] sm:$0xf] }
 0x4c4   :  { %v4186_v39 = vcombine.low %v4179_v26, %v4180_v27  ;;  %v4211_v40 = vmul.f32 %v4160_v22, %v6475_v18  ;;  %v4215_v41 = vmul.f32 %v4160_v22, %v6487_v31  ;;  %v4213_v28 = vmul.f32 %v4168_v20, %v6477_v19 }
 0x4c5   :  { %v4185_v50 = vcombine.low %v4177_v30, %v4178_v32  ;;  %v4217_v51 = vmul.f32 %v4168_v20, %v6489_v14 }
 0x4c6   :  { %v4200_v36 = vrot.slane %v4186_v39, %v6434_v35 }
 0x4c7   :  { %v4193_v49 = vrot.slane %v4185_v50, %v6434_v35 }
 0x4c9   :  { %v4201_v52 = vcombine.low %v4193_v49, %v4200_v36 }
 0x4cb   :  { %v4208_v25 = vrot.slane %v4201_v52, %v6434_v35 }
 0x4cd   :  { %v4210_v34 = vsub.f32 %v4155_v24, %v4208_v25 }
 0x4cf   :  { %v4227_v18 = vrot.slane %v4210_v34, %v6373_v47  ;;  %v4235_v31 = vrot.slane %v4210_v34, %v6376_v48  ;;  %v4223_v19 = vrot.slane %v4210_v34, %v6364_v44  ;;  %v4231_v14 = vrot.slane %v4210_v34, %v6367_v45  ;;  %v5123_v45 = vld [vmem:[%s6570_s12] ss:$0 sm:$0xff]  ;;  %s6219_s12 = smov [#allocation11]  }
 0x4d0   :  { %s4622_s30 = sshll.u32 %s6219_s12, 4  ;;  %s4623_s30 = int_to_ptr.vmem [resolvable:$true] %s4622_s30 }
 0x4d1   :  { %v4241_v55 = vadd.f32 %v4227_v18, %v4212_v33  ;;  %v4245_v43 = vadd.f32 %v4227_v18, %v4216_v37  ;;  %v4243_v56 = vadd.f32 %v4235_v31, %v4214_v38  ;;  %v4247_v57 = vadd.f32 %v4235_v31, %v4218_v29  ;;  %s6176_s7 = scalar_lea.vmem %s4623_s30, 256  ;;  %p6181_p13 = scmp.lt.s32.totalorder %s4623_s30, %s4623_s30 }
 0x4d2   :  { %v4240_v58 = vadd.f32 %v4223_v19, %v4211_v40  ;;  %v4244_v61 = vadd.f32 %v4223_v19, %v4215_v41  ;;  %v4242_v62 = vadd.f32 %v4231_v14, %v4213_v28  ;;  %v4246_v1 = vadd.f32 %v4231_v14, %v4217_v51  ;;  %p6177_p12 = scmp.ne.s32.totalorder %s4623_s30, %s6176_s7  ;;  %p6182_p0 = scmp.lt.s32.totalorder %s6176_s7, %s6176_s7 }
 0x4d3   :  { %v4249_v2 = vpack.c.bf16 %v4245_v43, %v4241_v55  ;;  %v4251_v3 = vpack.c.bf16 %v4247_v57, %v4243_v56 }
 0x4d4   :  { %v4248_v35 = vpack.c.bf16 %v4244_v61, %v4240_v58  ;;  %v4250_v4 = vpack.c.bf16 %v4246_v1, %v4242_v62  ;;  %p6183_p1 = por %p6182_p0, %p6181_p13 }
 0x4d5   :  { %4547 = vmatprep.mubr.bf16.mxu0 %v4249_v2  ;;  %4588 = vmatprep.mubr.bf16.mxu1 %v4251_v3 }
 0x4d6   :  { %4548 = vmatmul.mubr.bf16.vlgmr.msra.gmra.mrb[12].mxu0 %v4248_v35  ;;  %4589 = vmatmul.mubr.bf16.vlgmr.msra.gmra.mrb[12].mxu1 %v4250_v4  ;;  %p6184_p2 = pnand %p6183_p1, %p6177_p12 }
 0x5a9   :  { %v5172_v47 = vpop.f32.mrb[12].mxu0  ;;  %v5194_v44 = vpop.f32.mrb[12].mxu1 }
 0x5aa   :  { %v5173_v48 = vpop.f32.mrb[13].mxu0  ;;  %v5195_v5 = vpop.f32.mrb[13].mxu1 }
 0x5ab   :  { %v5174_v6 = vadd.f32 %v5173_v48, %v5172_v47  ;;  %v5196_v8 = vadd.f32 %v5195_v5, %v5194_v44  ;;  %v5175_v10 = vpop.f32.mrb[14].mxu0  ;;  %v5197_v12 = vpop.f32.mrb[14].mxu1 }
 0x5ac   :  { %v5176_v15 = vpop.f32.mrb[15].mxu0  ;;  %v5198_v9 = vpop.f32.mrb[15].mxu1 }
 0x5ad   :  { %v4550_v0 = vadd.f32 %v5174_v6, %v5123_v45  ;;  %v5177_v7 = vadd.f32 %v5176_v15, %v5175_v10  ;;  %v5199_v11 = vadd.f32 %v5198_v9, %v5197_v12 }
 0x5af   :  { %v4553_v53 = vadd.f32 %v5177_v7, %v5123_v45  ;;  %v4591_v42 = vadd.f32 %v5196_v8, %v4550_v0 }
 0x5b1   :  { %4597 = vmax.xlane.f32.xlu0 %v4591_v42  ;;  %v4594_v63 = vadd.f32 %v5199_v11, %v4553_v53 }
 0x5b5   :  { %4599 = vmax.xlane.f32.xlu0 %v4594_v63 }
 0x63e   :  { %v4598_v59 = vpop.xlane.xlu0 %4597 }
 0x63f   :  { %v4601_v54 = vsub.f32 %v4591_v42, %v4598_v59 }
 0x641   :  { %v4603_v46 = vmul.f32 1.442695, %v4601_v54 }
 0x642   :  { %v4600_v60 = vpop.xlane.xlu0 %4599 }
 0x643   :  { %6058 = vpow2.f32 %v4603_v46  ;;  %v4602_v13 = vsub.f32 %v4594_v63, %v4600_v60 }
 0x645   :  { %v4605_v16 = vmul.f32 1.442695, %v4602_v13 }
 0x647   :  { %6060 = vpow2.f32 %v4605_v16 }
 0x64d   :  { %v6059_v17 = vpop.eup %6058 }
 0x64e   :  { %4607 = vadd.xlane.f32.xlu1 %v6059_v17 }
 0x651   :  { %v6061_v20 = vpop.eup %6060 }
 0x652   :  { %4609 = vadd.xlane.f32.xlu1 %v6061_v20 }
 0x6db   :  { %v4608_v21 = vpop.xlane.xlu1 %4607 }
 0x6dc   :  { %6062 = vrcp.f32 %v4608_v21 }
 0x6df   :  { %v4610_v22 = vpop.xlane.xlu1 %4609 }
 0x6e0   :  { %6064 = vrcp.f32 %v4610_v22 }
 0x6e6   :  { %v6063_v23 = vpop.eup %6062 }
 0x6e7   :  { %v4613_v26 = vmul.f32 %v6063_v23, %v6059_v17 }
 0x6e9   :  { %4615 = vst [vmem:[#allocation11] sm:$0xff] %v4613_v26 }
 0x6ea   :  { %v6065_v27 = vpop.eup %6064 }
 0x6eb   :  { %v4614_v29 = vmul.f32 %v6065_v27, %v6061_v20 }
 0x6ed   :  { %4616 = vst [vmem:[#allocation11 + $0x8] sm:$0xff] %v4614_v29 }
 0x6ee   :  { %6187 = shalt.err (!%p6184_p2)
}
 0x6ef   :  { %s6188_s15 = scalar_lea.hbm %s6571_s13, 256 }
 0x6f0   :  { %p6189_p3 = scmp.ne.s32.totalorder %s6571_s13, %s6188_s15  ;;  %p6192_p4 = scmp.lt.u32.totalorder %s6188_s15, %s6571_s13 }
 0x6f2   :  { %p6194_p5 = pnand %p6192_p4, %p6189_p3 }
 0x6f4   :  { %6197 = shalt.err (!%p6194_p5)
}
 0x6f5   :  { %s6220_s3 = smov 128   ;;  %s6221_s18 = smov 8  }
 0x6f6   :  { %4628 = dma.vmem_to_hbm [thread:$0]  %s4623_s30, 256, %s6571_s13, [#allocation4], %s6220_s3, %s6220_s3, %s6221_s18  }
 0x6f7   :  { %6204 = dma.done.wait [#allocation4], 256  }
 0x6f8   :  { %6205 = vsyncadd [#allocation4], 4294967040 }
 0x6f9   :  { %4632 = vsyncpa [#allocation3], 1 }
 0x6fa   :  { %4633 = vsyncpa [#allocation6], 1 }
 0x6fb   :  { %4634 = vsyncpa [#allocation9], 1 }
 0x6fc   :  { %4635 = vsyncpa [#allocation4], 1 }

</bundles_post_ra>
